<compile_context>
chip_gen: v5e
topology: v5e:2x2
jax: 0.10.0
libtpu: 0.0.40
codegen_flags: <defaults>
</compile_context>

<pallas_src>
import functools

import jax
import jax.numpy as jnp
import numpy as np
from jax import lax
from jax.experimental import pallas as pl
from jax.experimental.pallas import tpu as pltpu

HIDDEN = 128  # stands in for 768; kept a multiple of 128 so vreg lanes are full
B_TILE = 8    # batch elements scored per grid step (use 32-128 at real scale)


# ---------------------------------------------------------------------------
# Pallas kernel: the scoring hot path (B_TILE batch elements per grid step)
# ---------------------------------------------------------------------------
def _rerank_score_kernel(sparse_ref, pair_ref, q_ref, cand_ref,
                         wp_ref, bp_ref, w1_ref, b1_ref, w2_ref, b2_ref,
                         out_ref, *, sparse_weight, pair_weight, match_weight):
    f32 = jnp.float32
    bt, k, h = pair_ref.shape

    pair = pair_ref[...]                         # (Bt, K, H) bf16
    cand = cand_ref[...]                         # (Bt, K, H) bf16
    q = q_ref[...]                               # (Bt, H)    f32

    def atten_weights(opts):
        # OptionAtten(score_mode='dot') softmax weights, batched over Bt:
        #   softmax((opts @ opts.T) / 28, dim=-1)
        att = jnp.einsum('bih,bjh->bij', opts, opts,
                         preferred_element_type=f32) * (1.0 / 28.0)
        att = att - jnp.max(att, axis=-1, keepdims=True)
        e = jnp.exp(att)
        inv = pl.reciprocal(jnp.sum(e, axis=-1, keepdims=True), approx=True)
        return e * inv                            # (Bt, K, K) f32

    # ---- pair attention -> pair2score = Linear(H, 1) ----------------------
    # Associativity: pair2score(att_w @ pair) == att_w @ (pair @ wp), so the
    # full (K,K)x(K,H) value matmul is never materialized.
    w_pair = atten_weights(pair)                                        # (Bt,K,K)
    pw = jnp.sum(pair.astype(f32) * wp_ref[...], axis=-1)               # (Bt,K)
    pair_score = jnp.sum(w_pair * pw[:, None, :], axis=-1) + bp_ref[...]  # (Bt,K)

    # ---- dense score: bmm(query_embed, candidate_embeds^T) ----------------
    d_score = jnp.sum(cand.astype(f32) * q[:, None, :], axis=-1)        # (Bt,K)

    # ---- option attention -> match layer (merged weights, flat matmuls) ---
    # match_layer = Dropout(0.5)[eval: identity] -> Linear(4H,2H) -> ReLU
    #               -> Linear(2H,1)
    w_cand = atten_weights(cand)                                        # (Bt,K,K)
    c_att = jnp.einsum('bij,bjh->bih', w_cand.astype(cand.dtype), cand,
                       preferred_element_type=f32)                      # (Bt,K,H)
    v_flat = c_att.reshape(bt * k, h)                                   # f32 flatten
    uv_flat = (q[:, None, :] * c_att).reshape(bt * k, h)                # f32 flatten
    q_w1a = jnp.dot(q.astype(jnp.bfloat16), w1_ref[0],
                    preferred_element_type=f32)                         # (Bt, 2H)
    h1_flat = (jnp.dot(v_flat.astype(jnp.bfloat16), w1_ref[1],
                       preferred_element_type=f32)
               + jnp.dot(uv_flat.astype(jnp.bfloat16), w1_ref[2],
                         preferred_element_type=f32))                   # (Bt*K, 2H)
    h1 = h1_flat.reshape(bt, k, 2 * h) + q_w1a[:, None, :] + b1_ref[...]
    h1 = jnp.maximum(h1, 0.0)
    match = jnp.sum(h1 * w2_ref[...], axis=-1) + b2_ref[...]            # (Bt,K)

    out_ref[...] = (sparse_weight * sparse_ref[...]
                    + pair_weight * pair_score
                    + d_score
                    + match_weight * match)


def rerank_scores_pallas(sparse_scores, pair_embed, query_embed, cand_embeds,
                         head, *, sparse_weight, pair_weight, match_weight,
                         b_tile=B_TILE):
    B, K, H = pair_embed.shape
    assert B % b_tile == 0, "demo assumes B is a multiple of the batch tile"
    kernel = functools.partial(_rerank_score_kernel,
                               sparse_weight=float(sparse_weight),
                               pair_weight=float(pair_weight),
                               match_weight=float(match_weight))

    # Merge the [u, v, u-v, u*v] concat-matmul in f32, then cast to bf16.
    w1 = head["w1"].astype(jnp.float32)                 # (4H, 2H)
    w1_u, w1_v, w1_d, w1_m = (w1[:H], w1[H:2 * H], w1[2 * H:3 * H], w1[3 * H:])
    w1_merged = jnp.stack([w1_u + w1_d,                 # multiplies u (query bcast)
                           w1_v - w1_d,                 # multiplies v (= cand atten)
                           w1_m]).astype(jnp.bfloat16)  # multiplies u * v

    flops = B * (6 * K * K * H                            # 2 Grams + 1 value matmul
                 + 8 * K * H * H + 4 * H * H              # merged match matmuls
                 + 2 * K * H + 2 * K * H + 2 * K * 2 * H  # per-row reductions
                 + 2 * K * K)                             # pair weighted sum
    bytes_accessed = (2 * B * K * H * 2 + B * H * 4 + B * K * 4     # activations
                      + 3 * H * 2 * H * 2 + 6 * H * 4 + 16          # weights
                      + B * K * 4)                                   # output
    cost = pl.CostEstimate(flops=int(flops), transcendentals=int(2 * B * K * K),
                           bytes_accessed=int(bytes_accessed))

    # NOTE: at production scale (H=768) also single-buffer the constant-index
    # weight specs (pipeline_mode=pl.Buffered(1)) and re-derive b_tile /
    # vmem_limit_bytes per generation (v7x has only 64 MiB VMEM, v5e's default
    # scoped limit is 16 MiB).
    out = pl.pallas_call(
        kernel,
        out_shape=jax.ShapeDtypeStruct((B, K), jnp.float32),
        grid_spec=pl.GridSpec(
            grid=(B // b_tile,),
            in_specs=[
                pl.BlockSpec((b_tile, K), lambda b: (b, 0)),          # sparse scores
                pl.BlockSpec((b_tile, K, H), lambda b: (b, 0, 0)),    # pair embeds
                pl.BlockSpec((b_tile, H), lambda b: (b, 0)),          # query embeds
                pl.BlockSpec((b_tile, K, H), lambda b: (b, 0, 0)),    # cand embeds
                pl.BlockSpec((1, H), lambda b: (0, 0)),               # pair2score W
                pl.BlockSpec((1, 1), lambda b: (0, 0)),               # pair2score b
                pl.BlockSpec((3, H, 2 * H), lambda b: (0, 0, 0)),     # merged W1
                pl.BlockSpec((1, 2 * H), lambda b: (0, 0)),           # match b1
                pl.BlockSpec((1, 2 * H), lambda b: (0, 0)),           # match W2
                pl.BlockSpec((1, 1), lambda b: (0, 0)),               # match b2
            ],
            out_specs=pl.BlockSpec((b_tile, K), lambda b: (b, 0)),
        ),
        compiler_params=pltpu.CompilerParams(
            dimension_semantics=("parallel",),
            vmem_limit_bytes=32 * 1024 * 1024),
        cost_estimate=cost,
    )(sparse_scores.astype(jnp.float32),
      pair_embed.astype(jnp.bfloat16),
      query_embed.astype(jnp.float32),
      cand_embeds.astype(jnp.bfloat16),
      head["wp"].astype(jnp.float32), head["bp"].astype(jnp.float32),
      w1_merged, head["b1"].astype(jnp.float32),
      head["w2"].astype(jnp.float32), head["b2"].astype(jnp.float32))
    return out


# ---------------------------------------------------------------------------
# Glue (plain JAX): synthetic encoder + forward wiring, mirroring the module
# ---------------------------------------------------------------------------
# TODO(synk): `self.encoder` is an externally injected BERT (not defined in this
# module); replaced by a deterministic synthetic embedding encoder whose output
# has the same interface (out[0][:, 0] is the CLS vector).
def synthetic_encoder(enc, input_ids, token_type_ids, attention_mask):
    h = enc["tok_emb"][input_ids] + enc["type_emb"][token_type_ids]   # (N, L, H)
    h = jnp.tanh(jnp.einsum("nlh,hd->nld", h, enc["w_enc"]))
    h = h * attention_mask.astype(jnp.float32)[..., None]
    return (h,)


def _encode_all(x, enc):
    query_token, candidate_tokens, query_candidate_tokens, sparse_scores = x
    B, K, L = candidate_tokens["input_ids"].shape
    _, _, LP = query_candidate_tokens["input_ids"].shape

    pair_embed = synthetic_encoder(
        enc,
        query_candidate_tokens["input_ids"].reshape(-1, LP),
        query_candidate_tokens["token_type_ids"].reshape(-1, LP),
        query_candidate_tokens["attention_mask"].reshape(-1, LP),
    )[0][:, 0].reshape(B, K, -1)

    query_embed = synthetic_encoder(
        enc,
        query_token["input_ids"][:, 0],
        query_token["token_type_ids"][:, 0],
        query_token["attention_mask"][:, 0],
    )[0][:, 0]                                                        # (B, H)

    cand_embeds = synthetic_encoder(
        enc,
        candidate_tokens["input_ids"].reshape(-1, L),
        candidate_tokens["token_type_ids"].reshape(-1, L),
        candidate_tokens["attention_mask"].reshape(-1, L),
    )[0][:, 0].reshape(B, K, -1)

    return pair_embed, query_embed, cand_embeds, sparse_scores


def rerank_forward(x, enc, head, *, sparse_weight, pair_weight):
    pair_embed, query_embed, cand_embeds, sparse_scores = _encode_all(x, enc)
    # RerankNet.__init__: match_weight = pair_weight
    return rerank_scores_pallas(sparse_scores, pair_embed, query_embed,
                                cand_embeds, head,
                                sparse_weight=sparse_weight,
                                pair_weight=pair_weight,
                                match_weight=pair_weight)


# ---------------------------------------------------------------------------
# Pure-JAX reference (mirrors the PyTorch forward 1:1) for verification
# ---------------------------------------------------------------------------
def _option_atten_ref(options):
    att = jnp.einsum("bih,bjh->bij", options, options,
                     precision=lax.Precision.HIGHEST) / 28.0
    w = jax.nn.softmax(att, axis=-1)
    return jnp.einsum("bij,bjh->bih", w, options, precision=lax.Precision.HIGHEST)


def rerank_forward_ref(x, enc, head, *, sparse_weight, pair_weight):
    pair_embed, query_embed, cand_embeds, sparse_scores = _encode_all(x, enc)
    B, K, _ = cand_embeds.shape
    q3 = query_embed[:, None, :]

    score = jnp.zeros((B, K), jnp.float32)
    score = score + sparse_weight * sparse_scores

    pair_att = _option_atten_ref(pair_embed)
    pair_score = jnp.sum(pair_att * head["wp"][0], axis=-1) + head["bp"][0, 0]
    score = score + pair_score * pair_weight

    d_score = jnp.einsum("bqh,bkh->bk", q3, cand_embeds,
                         precision=lax.Precision.HIGHEST)
    score = score + d_score

    cand_att = _option_atten_ref(cand_embeds)
    u = jnp.broadcast_to(q3, cand_att.shape)
    v = cand_att
    uv = jnp.concatenate([u, v, u - v, u * v], axis=-1)
    h1 = jax.nn.relu(jnp.einsum("bkf,fo->bko", uv, head["w1"],
                                precision=lax.Precision.HIGHEST) + head["b1"][0])
    match = jnp.sum(h1 * head["w2"][0], axis=-1) + head["b2"][0, 0]
    score = score + match * pair_weight   # match_weight == pair_weight
    return score


if __name__ == "__main__":
    B, K, L, LP, H, VOCAB = 16, 8, 8, 12, HIDDEN, 100
    root = jax.random.PRNGKey(0)
    ks = jax.random.split(root, 12)

    enc = {
        "tok_emb": 0.1 * jax.random.normal(ks[0], (VOCAB, H), jnp.float32),
        "type_emb": 0.1 * jax.random.normal(ks[1], (2, H), jnp.float32),
        "w_enc": jax.random.normal(ks[2], (H, H), jnp.float32) / np.sqrt(H),
    }
    head = {
        # pair2score: nn.Linear(H, 1) -> weight (1, H), bias (1,)
        "wp": 0.1 * jax.random.normal(ks[3], (1, H), jnp.float32),
        "bp": jnp.full((1, 1), 0.01, jnp.float32),
        # match_layer: Linear(4H, 2H) stored as weight.T -> (4H, 2H)
        "w1": jax.random.normal(ks[4], (4 * H, 2 * H), jnp.float32) / np.sqrt(4 * H),
        "b1": jnp.full((1, 2 * H), 0.01, jnp.float32),
        # match_layer: Linear(2H, 1) -> weight (1, 2H), bias (1,)
        "w2": 0.1 * jax.random.normal(ks[5], (1, 2 * H), jnp.float32),
        "b2": jnp.zeros((1, 1), jnp.float32),
    }

    def make_tokens(key, lead_shape, seq_len, n_types=1):
        k_ids, k_typ = jax.random.split(key)
        return {
            "input_ids": jax.random.randint(k_ids, lead_shape + (seq_len,), 0, VOCAB,
                                            dtype=jnp.int32),
            "token_type_ids": jax.random.randint(k_typ, lead_shape + (seq_len,), 0,
                                                 n_types, dtype=jnp.int32),
            "attention_mask": jnp.ones(lead_shape + (seq_len,), jnp.int32),
        }

    query_token = make_tokens(ks[6], (B, 1), L)
    candidate_tokens = make_tokens(ks[7], (B, K), L)
    query_candidate_tokens = make_tokens(ks[8], (B, K), LP, n_types=2)
    sparse_scores = 10.0 * jax.random.uniform(ks[9], (B, K), jnp.float32)

    x = (query_token, candidate_tokens, query_candidate_tokens, sparse_scores)

    out = rerank_forward(x, enc, head, sparse_weight=0.5, pair_weight=1.0)
    out = jax.block_until_ready(out)

    ref = rerank_forward_ref(x, enc, head, sparse_weight=0.5, pair_weight=1.0)
    # bf16 matmul operands (f32 accumulation) vs the f32 reference.
    np.testing.assert_allclose(np.asarray(out), np.asarray(ref), rtol=2e-2, atol=3e-2)

    print("KERNEL_OK")
</pallas_src>

<mosaic_0001>
module attributes {stable_mosaic.version = 11 : i64} {
  func.func @_rerank_score_kernel(%arg0: i32, %arg1: memref<8x8xf32, #tpu.memory_space<vmem>>, %arg2: memref<8x8x128xbf16, #tpu.memory_space<vmem>>, %arg3: memref<8x128xf32, #tpu.memory_space<vmem>>, %arg4: memref<8x8x128xbf16, #tpu.memory_space<vmem>>, %arg5: memref<1x128xf32, #tpu.memory_space<vmem>>, %arg6: memref<1x1xf32, #tpu.memory_space<vmem>>, %arg7: memref<3x128x256xbf16, #tpu.memory_space<vmem>>, %arg8: memref<1x256xf32, #tpu.memory_space<vmem>>, %arg9: memref<1x256xf32, #tpu.memory_space<vmem>>, %arg10: memref<1x1xf32, #tpu.memory_space<vmem>>, %arg11: memref<8x8xf32, #tpu.memory_space<vmem>>) attributes {dimension_semantics = [#tpu.dimension_semantics<parallel>], iteration_bounds = array<i64: 2>, scalar_prefetch = 0 : i64, scratch_operands = 0 : i64, tpu.core_type = #tpu.core_type<tc>, window_params = [{transform_indices = @transform_0, window_bounds = array<i64: 8, 8>}, {transform_indices = @transform_1, window_bounds = array<i64: 8, 8, 128>}, {transform_indices = @transform_2, window_bounds = array<i64: 8, 128>}, {transform_indices = @transform_3, window_bounds = array<i64: 8, 8, 128>}, {pipeline_mode = #tpu.pipeline_mode<synchronous>, transform_indices = @transform_4, window_bounds = array<i64: 1, 128>}, {pipeline_mode = #tpu.pipeline_mode<synchronous>, transform_indices = @transform_5, window_bounds = array<i64: 1, 1>}, {pipeline_mode = #tpu.pipeline_mode<synchronous>, transform_indices = @transform_6, window_bounds = array<i64: 3, 128, 256>}, {pipeline_mode = #tpu.pipeline_mode<synchronous>, transform_indices = @transform_7, window_bounds = array<i64: 1, 256>}, {pipeline_mode = #tpu.pipeline_mode<synchronous>, transform_indices = @transform_8, window_bounds = array<i64: 1, 256>}, {pipeline_mode = #tpu.pipeline_mode<synchronous>, transform_indices = @transform_9, window_bounds = array<i64: 1, 1>}, {transform_indices = @transform_10, window_bounds = array<i64: 8, 8>}]} {
    %c0 = arith.constant 0 : index
    %c0_0 = arith.constant 0 : index
    %c0_1 = arith.constant 0 : index
    %0 = vector.load %arg2[%c0, %c0_0, %c0_1] : memref<8x8x128xbf16, #tpu.memory_space<vmem>>, vector<8x8x128xbf16>
    %c0_2 = arith.constant 0 : index
    %c0_3 = arith.constant 0 : index
    %c0_4 = arith.constant 0 : index
    %1 = vector.load %arg4[%c0_2, %c0_3, %c0_4] : memref<8x8x128xbf16, #tpu.memory_space<vmem>>, vector<8x8x128xbf16>
    %c0_5 = arith.constant 0 : index
    %c0_6 = arith.constant 0 : index
    %2 = vector.load %arg3[%c0_5, %c0_6] : memref<8x128xf32, #tpu.memory_space<vmem>>, vector<8x128xf32>
    "tpu.trace_start"() <{level = 10 : i32, message = "bih,bjh->bij"}> : () -> ()
    %cst = arith.constant dense<0.000000e+00> : vector<8x8x8xf32>
    %3 = tpu.matmul %0, %0, %cst {dimension_numbers = #tpu.dot_dimension_numbers<[2], [2], [1], [1], [0, 0, 0, 1, 1, 1], [0], [0]>} : vector<8x8x128xbf16>, vector<8x8x128xbf16>, vector<8x8x8xf32> -> vector<8x8x8xf32>
    "tpu.trace_stop"() : () -> ()
    %cst_7 = arith.constant 0.0357142873 : f32
    %4 = vector.broadcast %cst_7 : f32 to vector<8x8x8xf32>
    %5 = arith.mulf %3, %4 : vector<8x8x8xf32>
    %cst_8 = arith.constant dense<0xFF800000> : vector<8x8xf32>
    %6 = vector.multi_reduction <maximumf>, %5, %cst_8 [2] : vector<8x8x8xf32> to vector<8x8xf32>
    %7 = vector.shape_cast %6 : vector<8x8xf32> to vector<8x8x1xf32>
    %8 = vector.broadcast %7 : vector<8x8x1xf32> to vector<8x8x8xf32>
    %9 = arith.subf %5, %8 : vector<8x8x8xf32>
    %10 = math.exp %9 : vector<8x8x8xf32>
    %cst_9 = arith.constant dense<0.000000e+00> : vector<8x8xf32>
    %11 = vector.multi_reduction <add>, %10, %cst_9 [2] : vector<8x8x8xf32> to vector<8x8xf32>
    %12 = vector.shape_cast %11 : vector<8x8xf32> to vector<8x8x1xf32>
    %13 = tpu.reciprocal %12 {approx = true} : vector<8x8x1xf32> -> vector<8x8x1xf32>
    %14 = vector.broadcast %13 : vector<8x8x1xf32> to vector<8x8x8xf32>
    %15 = arith.mulf %10, %14 : vector<8x8x8xf32>
    %16 = arith.extf %0 : vector<8x8x128xbf16> to vector<8x8x128xf32>
    %c0_10 = arith.constant 0 : index
    %c0_11 = arith.constant 0 : index
    %17 = vector.load %arg5[%c0_10, %c0_11] : memref<1x128xf32, #tpu.memory_space<vmem>>, vector<1x128xf32>
    %18 = vector.shape_cast %17 : vector<1x128xf32> to vector<1x1x128xf32>
    %19 = vector.broadcast %18 : vector<1x1x128xf32> to vector<8x8x128xf32>
    %20 = arith.mulf %16, %19 : vector<8x8x128xf32>
    %cst_12 = arith.constant dense<0.000000e+00> : vector<8x8xf32>
    %21 = vector.multi_reduction <add>, %20, %cst_12 [2] : vector<8x8x128xf32> to vector<8x8xf32>
    %22 = vector.shape_cast %21 : vector<8x8xf32> to vector<8x1x8xf32>
    %23 = vector.broadcast %22 : vector<8x1x8xf32> to vector<8x8x8xf32>
    %24 = arith.mulf %15, %23 : vector<8x8x8xf32>
    %cst_13 = arith.constant dense<0.000000e+00> : vector<8x8xf32>
    %25 = vector.multi_reduction <add>, %24, %cst_13 [2] : vector<8x8x8xf32> to vector<8x8xf32>
    %c0_14 = arith.constant 0 : index
    %c0_15 = arith.constant 0 : index
    %26 = vector.load %arg6[%c0_14, %c0_15] : memref<1x1xf32, #tpu.memory_space<vmem>>, vector<1x1xf32>
    %27 = vector.broadcast %26 : vector<1x1xf32> to vector<8x8xf32>
    %28 = arith.addf %25, %27 : vector<8x8xf32>
    %29 = arith.extf %1 : vector<8x8x128xbf16> to vector<8x8x128xf32>
    %30 = vector.shape_cast %2 : vector<8x128xf32> to vector<8x1x128xf32>
    %31 = vector.broadcast %30 : vector<8x1x128xf32> to vector<8x8x128xf32>
    %32 = arith.mulf %29, %31 : vector<8x8x128xf32>
    %cst_16 = arith.constant dense<0.000000e+00> : vector<8x8xf32>
    %33 = vector.multi_reduction <add>, %32, %cst_16 [2] : vector<8x8x128xf32> to vector<8x8xf32>
    "tpu.trace_start"() <{level = 10 : i32, message = "bih,bjh->bij"}> : () -> ()
    %cst_17 = arith.constant dense<0.000000e+00> : vector<8x8x8xf32>
    %34 = tpu.matmul %1, %1, %cst_17 {dimension_numbers = #tpu.dot_dimension_numbers<[2], [2], [1], [1], [0, 0, 0, 1, 1, 1], [0], [0]>} : vector<8x8x128xbf16>, vector<8x8x128xbf16>, vector<8x8x8xf32> -> vector<8x8x8xf32>
    "tpu.trace_stop"() : () -> ()
    %cst_18 = arith.constant 0.0357142873 : f32
    %35 = vector.broadcast %cst_18 : f32 to vector<8x8x8xf32>
    %36 = arith.mulf %34, %35 : vector<8x8x8xf32>
    %cst_19 = arith.constant dense<0xFF800000> : vector<8x8xf32>
    %37 = vector.multi_reduction <maximumf>, %36, %cst_19 [2] : vector<8x8x8xf32> to vector<8x8xf32>
    %38 = vector.shape_cast %37 : vector<8x8xf32> to vector<8x8x1xf32>
    %39 = vector.broadcast %38 : vector<8x8x1xf32> to vector<8x8x8xf32>
    %40 = arith.subf %36, %39 : vector<8x8x8xf32>
    %41 = math.exp %40 : vector<8x8x8xf32>
    %cst_20 = arith.constant dense<0.000000e+00> : vector<8x8xf32>
    %42 = vector.multi_reduction <add>, %41, %cst_20 [2] : vector<8x8x8xf32> to vector<8x8xf32>
    %43 = vector.shape_cast %42 : vector<8x8xf32> to vector<8x8x1xf32>
    %44 = tpu.reciprocal %43 {approx = true} : vector<8x8x1xf32> -> vector<8x8x1xf32>
    %45 = vector.broadcast %44 : vector<8x8x1xf32> to vector<8x8x8xf32>
    %46 = arith.mulf %41, %45 : vector<8x8x8xf32>
    %47 = arith.truncf %46 : vector<8x8x8xf32> to vector<8x8x8xbf16>
    "tpu.trace_start"() <{level = 10 : i32, message = "bij,bjh->bih"}> : () -> ()
    %cst_21 = arith.constant dense<0.000000e+00> : vector<8x8x128xf32>
    %48 = tpu.matmul %47, %1, %cst_21 {dimension_numbers = #tpu.dot_dimension_numbers<[2], [1], [1], [2], [0, 0, 0, 1, 1, 2], [0], [0]>} : vector<8x8x8xbf16>, vector<8x8x128xbf16>, vector<8x8x128xf32> -> vector<8x8x128xf32>
    "tpu.trace_stop"() : () -> ()
    %49 = vector.shape_cast %48 : vector<8x8x128xf32> to vector<64x128xf32>
    %50 = vector.shape_cast %2 : vector<8x128xf32> to vector<8x1x128xf32>
    %51 = vector.broadcast %50 : vector<8x1x128xf32> to vector<8x8x128xf32>
    %52 = arith.mulf %51, %48 : vector<8x8x128xf32>
    %53 = vector.shape_cast %52 : vector<8x8x128xf32> to vector<64x128xf32>
    %54 = arith.truncf %2 : vector<8x128xf32> to vector<8x128xbf16>
    %c0_22 = arith.constant 0 : index
    %c0_23 = arith.constant 0 : index
    %c0_24 = arith.constant 0 : index
    %55 = vector.load %arg7[%c0_22, %c0_23, %c0_24] : memref<3x128x256xbf16, #tpu.memory_space<vmem>>, vector<1x128x256xbf16>
    %56 = vector.shape_cast %55 : vector<1x128x256xbf16> to vector<128x256xbf16>
    %cst_25 = arith.constant dense<0.000000e+00> : vector<8x256xf32>
    %57 = tpu.matmul %54, %56, %cst_25 {dimension_numbers = #tpu.dot_dimension_numbers<[1], [0], [0], [1], [0, 0, 1, 1], [], []>} : vector<8x128xbf16>, vector<128x256xbf16>, vector<8x256xf32> -> vector<8x256xf32>
    %58 = arith.truncf %49 : vector<64x128xf32> to vector<64x128xbf16>
    %c1 = arith.constant 1 : index
    %c0_26 = arith.constant 0 : index
    %c0_27 = arith.constant 0 : index
    %59 = vector.load %arg7[%c1, %c0_26, %c0_27] : memref<3x128x256xbf16, #tpu.memory_space<vmem>>, vector<1x128x256xbf16>
    %60 = vector.shape_cast %59 : vector<1x128x256xbf16> to vector<128x256xbf16>
    %cst_28 = arith.constant dense<0.000000e+00> : vector<64x256xf32>
    %61 = tpu.matmul %58, %60, %cst_28 {dimension_numbers = #tpu.dot_dimension_numbers<[1], [0], [0], [1], [0, 0, 1, 1], [], []>} : vector<64x128xbf16>, vector<128x256xbf16>, vector<64x256xf32> -> vector<64x256xf32>
    %62 = arith.truncf %53 : vector<64x128xf32> to vector<64x128xbf16>
    %c2 = arith.constant 2 : index
    %c0_29 = arith.constant 0 : index
    %c0_30 = arith.constant 0 : index
    %63 = vector.load %arg7[%c2, %c0_29, %c0_30] : memref<3x128x256xbf16, #tpu.memory_space<vmem>>, vector<1x128x256xbf16>
    %64 = vector.shape_cast %63 : vector<1x128x256xbf16> to vector<128x256xbf16>
    %cst_31 = arith.constant dense<0.000000e+00> : vector<64x256xf32>
    %65 = tpu.matmul %62, %64, %cst_31 {dimension_numbers = #tpu.dot_dimension_numbers<[1], [0], [0], [1], [0, 0, 1, 1], [], []>} : vector<64x128xbf16>, vector<128x256xbf16>, vector<64x256xf32> -> vector<64x256xf32>
    %66 = arith.addf %61, %65 : vector<64x256xf32>
    %67 = vector.shape_cast %66 : vector<64x256xf32> to vector<8x8x256xf32>
    %68 = vector.shape_cast %57 : vector<8x256xf32> to vector<8x1x256xf32>
    %69 = vector.broadcast %68 : vector<8x1x256xf32> to vector<8x8x256xf32>
    %70 = arith.addf %67, %69 : vector<8x8x256xf32>
    %c0_32 = arith.constant 0 : index
    %c0_33 = arith.constant 0 : index
    %71 = vector.load %arg8[%c0_32, %c0_33] : memref<1x256xf32, #tpu.memory_space<vmem>>, vector<1x256xf32>
    %72 = vector.shape_cast %71 : vector<1x256xf32> to vector<1x1x256xf32>
    %73 = vector.broadcast %72 : vector<1x1x256xf32> to vector<8x8x256xf32>
    %74 = arith.addf %70, %73 : vector<8x8x256xf32>
    %cst_34 = arith.constant 0.000000e+00 : f32
    %75 = vector.broadcast %cst_34 : f32 to vector<8x8x256xf32>
    %76 = arith.maximumf %74, %75 : vector<8x8x256xf32>
    %c0_35 = arith.constant 0 : index
    %c0_36 = arith.constant 0 : index
    %77 = vector.load %arg9[%c0_35, %c0_36] : memref<1x256xf32, #tpu.memory_space<vmem>>, vector<1x256xf32>
    %78 = vector.shape_cast %77 : vector<1x256xf32> to vector<1x1x256xf32>
    %79 = vector.broadcast %78 : vector<1x1x256xf32> to vector<8x8x256xf32>
    %80 = arith.mulf %76, %79 : vector<8x8x256xf32>
    %cst_37 = arith.constant dense<0.000000e+00> : vector<8x8xf32>
    %81 = vector.multi_reduction <add>, %80, %cst_37 [2] : vector<8x8x256xf32> to vector<8x8xf32>
    %c0_38 = arith.constant 0 : index
    %c0_39 = arith.constant 0 : index
    %82 = vector.load %arg10[%c0_38, %c0_39] : memref<1x1xf32, #tpu.memory_space<vmem>>, vector<1x1xf32>
    %83 = vector.broadcast %82 : vector<1x1xf32> to vector<8x8xf32>
    %84 = arith.addf %81, %83 : vector<8x8xf32>
    %c0_40 = arith.constant 0 : index
    %c0_41 = arith.constant 0 : index
    %85 = vector.load %arg1[%c0_40, %c0_41] : memref<8x8xf32, #tpu.memory_space<vmem>>, vector<8x8xf32>
    %cst_42 = arith.constant 5.000000e-01 : f32
    %86 = vector.broadcast %cst_42 : f32 to vector<8x8xf32>
    %87 = arith.mulf %86, %85 : vector<8x8xf32>
    %cst_43 = arith.constant 1.000000e+00 : f32
    %88 = vector.broadcast %cst_43 : f32 to vector<8x8xf32>
    %89 = arith.mulf %88, %28 : vector<8x8xf32>
    %90 = arith.addf %87, %89 : vector<8x8xf32>
    %91 = arith.addf %90, %33 : vector<8x8xf32>
    %cst_44 = arith.constant 1.000000e+00 : f32
    %92 = vector.broadcast %cst_44 : f32 to vector<8x8xf32>
    %93 = arith.mulf %92, %84 : vector<8x8xf32>
    %94 = arith.addf %91, %93 : vector<8x8xf32>
    %c0_45 = arith.constant 0 : index
    %c0_46 = arith.constant 0 : index
    %95 = vector.load %arg11[%c0_45, %c0_46] : memref<8x8xf32, #tpu.memory_space<vmem>>, vector<8x8xf32>
    tpu.vector_store %arg11[%c0_45, %c0_46], %94 {strides = array<i32>} : memref<8x8xf32, #tpu.memory_space<vmem>>, vector<8x8xf32>,
    return
  }
  func.func @transform_0(%arg0: i32) -> (i32, i32) {
    %c0_i32 = arith.constant 0 : i32
    %c0_i32_0 = arith.constant 0 : i32
    return %arg0, %c0_i32 : i32, i32
  }
  func.func @transform_1(%arg0: i32) -> (i32, i32, i32) {
    %c0_i32 = arith.constant 0 : i32
    %c0_i32_0 = arith.constant 0 : i32
    %c0_i32_1 = arith.constant 0 : i32
    return %arg0, %c0_i32, %c0_i32_0 : i32, i32, i32
  }
  func.func @transform_2(%arg0: i32) -> (i32, i32) {
    %c0_i32 = arith.constant 0 : i32
    %c0_i32_0 = arith.constant 0 : i32
    return %arg0, %c0_i32 : i32, i32
  }
  func.func @transform_3(%arg0: i32) -> (i32, i32, i32) {
    %c0_i32 = arith.constant 0 : i32
    %c0_i32_0 = arith.constant 0 : i32
    %c0_i32_1 = arith.constant 0 : i32
    return %arg0, %c0_i32, %c0_i32_0 : i32, i32, i32
  }
  func.func @transform_4(%arg0: i32) -> (i32, i32) {
    %c0_i32 = arith.constant 0 : i32
    %c0_i32_0 = arith.constant 0 : i32
    %c0_i32_1 = arith.constant 0 : i32
    return %c0_i32, %c0_i32_0 : i32, i32
  }
  func.func @transform_5(%arg0: i32) -> (i32, i32) {
    %c0_i32 = arith.constant 0 : i32
    %c0_i32_0 = arith.constant 0 : i32
    %c0_i32_1 = arith.constant 0 : i32
    return %c0_i32, %c0_i32_0 : i32, i32
  }
  func.func @transform_6(%arg0: i32) -> (i32, i32, i32) {
    %c0_i32 = arith.constant 0 : i32
    %c0_i32_0 = arith.constant 0 : i32
    %c0_i32_1 = arith.constant 0 : i32
    %c0_i32_2 = arith.constant 0 : i32
    return %c0_i32, %c0_i32_0, %c0_i32_1 : i32, i32, i32
  }
  func.func @transform_7(%arg0: i32) -> (i32, i32) {
    %c0_i32 = arith.constant 0 : i32
    %c0_i32_0 = arith.constant 0 : i32
    %c0_i32_1 = arith.constant 0 : i32
    return %c0_i32, %c0_i32_0 : i32, i32
  }
  func.func @transform_8(%arg0: i32) -> (i32, i32) {
    %c0_i32 = arith.constant 0 : i32
    %c0_i32_0 = arith.constant 0 : i32
    %c0_i32_1 = arith.constant 0 : i32
    return %c0_i32, %c0_i32_0 : i32, i32
  }
  func.func @transform_9(%arg0: i32) -> (i32, i32) {
    %c0_i32 = arith.constant 0 : i32
    %c0_i32_0 = arith.constant 0 : i32
    %c0_i32_1 = arith.constant 0 : i32
    return %c0_i32, %c0_i32_0 : i32, i32
  }
  func.func @transform_10(%arg0: i32) -> (i32, i32) {
    %c0_i32 = arith.constant 0 : i32
    %c0_i32_0 = arith.constant 0 : i32
    return %arg0, %c0_i32 : i32, i32
  }
}

</mosaic_0001>

<bundles_post_ra>
// kernel: tpu_custom_call.1
= control target key start
LH: loop header
LB: loop body
LE: loop exit
PB: predicated region body
PF: predicated region fallthrough
CT: control target
= control target key end

     0   :  { %s3337_s0 = inlined_call_operand.vmem [shape: f32[16,8], index: 0, kind: input, shape index: {}]   ;;  %s3338_s1 = inlined_call_operand.hbm [shape: bf16[16,8,128], index: 1, kind: input, shape index: {}]   ;;  %s3339_s2 = inlined_call_operand.vmem [shape: f32[16,128], index: 2, kind: input, shape index: {}]   ;;  %s3340_s3 = inlined_call_operand.hbm [shape: bf16[16,8,128], index: 3, kind: input, shape index: {}]   ;;  %s3341_s4 = inlined_call_operand.vmem [shape: f32[1,128], index: 4, kind: input, shape index: {}]   ;;  %s3342_s5 = inlined_call_operand.<no memory space> [shape: f32[1,1], index: 5, kind: input, shape index: {}]   ;;  %s3343_s6 = inlined_call_operand.hbm [shape: bf16[3,128,256], index: 6, kind: input, shape index: {}]   ;;  %s3344_s7 = inlined_call_operand.vmem [shape: f32[1,256], index: 7, kind: input, shape index: {}]   ;;  %s3345_s8 = inlined_call_operand.vmem [shape: f32[1,256], index: 8, kind: input, shape index: {}]   ;;  %s3346_s10 = inlined_call_operand.vmem [shape: f32[16,8], index: 10, kind: output, shape index: {}]   ;;  %s3347_s9 = inlined_call_operand.<no memory space> [shape: f32[1,1], index: 9, kind: input, shape index: {}]  }
   0x1   :  { %3350 = sst [smem:[#allocation14_spill]] %s3338_s1  ;;  %v15_v0 = vstv %s3342_s5  ;;  %v17_v1 = vstv %s3347_s9 }
   0x2   :  { %3351 = sst [smem:[#allocation15_spill]] %s3343_s6  ;;  %16 = vst [vmem:[#allocation2] sm:$0x1] %v15_v0 }
   0x3   :  { %18 = vst [vmem:[#allocation3] sm:$0x1] %v17_v1 }
   0x4   :  { %19 = vsyncpa [#allocation5], 0 }
   0x5   :  { %21 = vsyncpa [#allocation5 + $0x1], 0 }
   0x6   :  { %22 = vsyncpa [#allocation7], 0 }
   0x7   :  { %24 = vsyncpa [#allocation7 + $0x1], 0  ;;  %s2698_s17 = smov 0   ;;  %s2700_s18 = smov 0  }
   0x8   :  { %s2702_s19 = smov 0   ;;  %s2704_s20 = smov 0  }
   0x9 LB: > { %3352 = sst [smem:[#allocation12_spill]] %s2625_s19  ;;  %s2717_s5 = sadd.s32 4294967295, %s2629_s20   ;;  %s2629_s20 = sphi %s2704_s20, %s3364_s20   ;;  %s2625_s19 = sphi %s2702_s19, %s3361_s19   ;;  %s2621_s18 = sphi %s2700_s18, %s3363_s18   ;;  %s2617_s17 = sphi %s2698_s17, %s3362_s17  }
   0xa   : > { %p76_p0 = scmp.ne.s32.totalorder %s2621_s18, %s2617_s17  ;;  %p77_p1 = scmp.eq.s32.totalorder %s2717_s5, 0 }
   0xb   : > { %p2094_p2 = scmp.ge.s32.totalorder %s2629_s20, 1  ;;  %p291_p3 = scmp.lt.s32.totalorder %s2629_s20, 3 }
   0xc   : > { %p2725_p4 = por %p77_p1, %p76_p0  ;;  %s3354_s6 = sld [smem:[#allocation15_spill]] }
   0xd   : > { %p2732_p5 = pnand %p2094_p2, %p291_p3  ;;  %s2631_s25 = smov [#allocation8]  }
   0xe   : > { %s310_s26 = sshll.u32 %s2631_s25, 4  ;;  %s2741_s27 = sadd.s32 1, %s2629_s20   ;;  %s311_s26 = int_to_ptr.vmem [resolvable:$true] %s310_s26 }
   0xf   : > { %p2370_p6 = pneg %p2732_p5  ;;  %s2632_s28 = smov 128  }
  0x10   : > { %s2633_s29 = smov 8   ;;  %s60_s30 = ssub.s32 %s2629_s20, %s2741_s27 }
  0x11   : > { %p2371_p7 = pnand %p2370_p6, %p77_p1  ;;  %s63_s11 = sadd.s32 1, %s2625_s19 }
  0x12   : > { %s308_s23 = sshll.u32 %s3354_s6, 4  ;;  %p61_p8 = scmp.eq.s32.totalorder %s60_s30, 0  ;;  %s309_s23 = int_to_ptr.hbm [resolvable:$true] %s308_s23 }
  0x13   : > { %2373 = dma.hbm_to_vmem [thread:$0]  (!%p2371_p7), %s309_s23, 6144, %s311_s26, [#allocation7], %s2632_s28, %s2632_s28, %s2633_s29  }
  0x14   : > { %p70_p9 = scmp.ne.s32.totalorder %s2625_s19, %s2621_s18  ;;  %p71_p10 = scmp.eq.s32.totalorder %s2629_s20, 0 }
  0x15   : > { %p2382_p11 = scmp.lt.s32.totalorder %s2629_s20, 2  ;;  %s340_s13 = sand.u32 1, %s2625_s19  }
  0x16   : > { %s2751_s12 = scalar_select %p61_p8, %s2625_s19, %s63_s11  }
  0x17   : > { %p72_p12 = por %p71_p10, %p70_p9  ;;  %s2754_s14 = sshll.u32 %s340_s13, 5 }
  0x18   : > { %3356 = sst [smem:[#allocation13_spill]] %s2751_s12  ;;  %s3348_s15 = sshll.u32 %s2629_s20, 5 }
  0x19   : > { %s3357_s1 = sld [smem:[#allocation14_spill]]  ;;  %s344_s22 = scalar_lea.vmem [#allocation4], %s2754_s14 }
  0x1a   : > { %s352_s23 = sshll.u32 %s344_s22, 4  ;;  %p2763_p13 = pnand %p2382_p11, %p72_p12  ;;  %s353_s23 = int_to_ptr.vmem [resolvable:$true] %s352_s23 }
  0x1b   : > { %s341_s28 = scalar_lea.sflag [#allocation5], %s340_s13 }
  0x1c   : > { %p2531_p2 = pneg %p2763_p13 }
  0x1f   : > { %s349_s21 = scalar_lea.hbm %s3357_s1, %s3348_s15  ;;  %s2534_s17 = scalar_lea.hbm %s3357_s1, 64 }
  0x20   : > { %s350_s25 = sshll.u32 %s349_s21, 4  ;;  %s351_s25 = int_to_ptr.hbm [resolvable:$true] %s350_s25 }
  0x21   : > { %s2527_s29 = sshra.s32 %s351_s25, 4  ;;  %s2528_s29 = int_to_ptr.hbm [resolvable:$true] %s2527_s29 }
  0x22   : > { %s2529_s30 = scalar_lea.hbm %s2528_s29, 32  ;;  %p2535_p7 = scmp.lt.s32.totalorder %s2528_s29, %s3357_s1 }
  0x23   : > { %p2530_p0 = scmp.ne.s32.totalorder %s2528_s29, %s2529_s30  ;;  %p2536_p8 = scmp.lt.s32.totalorder %s2534_s17, %s2529_s30 }
  0x25   : > { %p2532_p3 = pnand %p2531_p2, %p2530_p0  ;;  %p2537_p9 = por %p2536_p8, %p2535_p7 }
  0x27   : > { %p2533_p6 = pneg %p2532_p3 }
  0x29   : > { %p2538_p10 = pnand %p2537_p9, %p2533_p6 }
  0x2b   : > { %2541 = shalt.err (!%p2538_p10)
}
  0x2c   : > { %s2634_s13 = smov 64   ;;  %s2635_s15 = smov 4  }
  0x2d   : > { %2377 = dma.hbm_to_vmem [thread:$0]  (!%p2763_p13), %s351_s25, 512, %s353_s23, %s341_s28, %s2634_s13, %s2634_s13, %s2635_s15  }
  0x2e   : > { %s3359_s6 = sshll.u32 %s2629_s20, 5  ;;  %s373_s21 = scalar_lea.vmem [#allocation6], %s2754_s14 }
  0x2f   : > { %s378_s12 = scalar_lea.hbm %s3340_s3, %s3359_s6  ;;  %s381_s29 = sshll.u32 %s373_s21, 4  ;;  %s382_s29 = int_to_ptr.vmem [resolvable:$true] %s381_s29 }
  0x30   : > { %s379_s30 = sshll.u32 %s378_s12, 4  ;;  %s369_s17 = sand.u32 1, %s2629_s20   ;;  %s380_s30 = int_to_ptr.hbm [resolvable:$true] %s379_s30 }
  0x31   : > { %s370_s22 = scalar_lea.sflag [#allocation7], %s369_s17  ;;  %s2557_s1 = sshra.s32 %s380_s30, 4  ;;  %s2558_s1 = int_to_ptr.hbm [resolvable:$true] %s2557_s1 }
  0x32   : > { %s2559_s19 = scalar_lea.hbm %s2558_s1, 32  ;;  %s2564_s28 = scalar_lea.hbm %s3340_s3, 64 }
  0x33   : > { %p2560_p11 = scmp.ne.s32.totalorder %s2558_s1, %s2559_s19  ;;  %p2565_p3 = scmp.lt.s32.totalorder %s2558_s1, %s3340_s3 }
  0x34   : > { %p2566_p6 = scmp.lt.s32.totalorder %s2564_s28, %s2559_s19 }
  0x35   : > { %p2562_p12 = pnand %p2560_p11, %p2531_p2 }
  0x36   : > { %p2567_p7 = por %p2566_p6, %p2565_p3 }
  0x37   : > { %p2563_p0 = pneg %p2562_p12 }
  0x39   : > { %p2568_p8 = pnand %p2567_p7, %p2563_p0 }
  0x3b   : > { %2571 = shalt.err (!%p2568_p8)
}
  0x3c   : > { %2380 = dma.hbm_to_vmem [thread:$0]  (!%p2763_p13), %s380_s30, 512, %s382_s29, %s370_s22, %s2634_s13, %s2634_s13, %s2635_s15  }
  0x3d   : > { %393 = sbr.rel (%p2732_p5) target bundleno = 978 (0x3d2), region = 60  ;;  %s395_s20 = sand.u32 (!%p2732_p5), 1, %s2621_s18  }
  0x3e   : > { %s2104_s12 = sshll.u32 (!%p2732_p5), %s395_s20, 5  ;;  %s396_s11 = scalar_lea.sflag (!%p2732_p5), [#allocation5], %s395_s20 }
  0x3f   : > { %s399_s16 = scalar_lea.vmem (!%p2732_p5), [#allocation4], %s2104_s12 }
  0x42   : > { %2604 = dma.done.wait (%p2725_p4), %s396_s11, 512  }
  0x43   : > { %2606 = vsyncadd (%p2725_p4), %s396_s11, 4294966784  ;;  %s405_s1 = sand.u32 1, %s2717_s5   ;;  %s2806_s26 = scalar_lea.vmem [#allocation6], %s2104_s12 }
  0x44   : > { %s406_s19 = scalar_lea.sflag [#allocation7], %s405_s1 }
  0x45   : > { %2608 = dma.done.wait (%p2725_p4), %s406_s19, 512  }
  0x46   : > { %2610 = vsyncadd (%p2725_p4), %s406_s19, 4294966784 }
  0x47   : > { %2612 = dma.done.wait (%p77_p1), [#allocation7], 6144  }
  0x48   : > { %2614 = vsyncadd (%p77_p1), [#allocation7], 4294961152  ;;  %v2816_v2 = vld [vmem:[%s399_s16] sm:$0xf]  ;;  %v2818_v3 = vld [vmem:[%s399_s16 + $0x4] sm:$0xf] }
  0x49   : > { %v2820_v4 = vld [vmem:[%s399_s16 + $0x10] sm:$0xf]  ;;  %503 = vmatpush.bf16.xpose.msra.mxu2 %v2816_v2  ;;  %516 = vmatpush.bf16.xpose.msra.mxu3 %v2818_v3  ;;  %v2824_v5 = vld [vmem:[%s399_s16 + $0x8] sm:$0xf]  ;;  %v2826_v6 = vld [vmem:[%s399_s16 + $0x14] sm:$0xf] }
  0x4a   : > { %v2828_v7 = vld [vmem:[%s399_s16 + $0xc] sm:$0xf]  ;;  %555 = vmatpush.bf16.xpose.msra.mxu0 %v2820_v4  ;;  %v2833_v8 = vld [vmem:[%s2806_s26] sm:$0xf]  ;;  %v2836_v9 = vld [vmem:[%s2806_s26 + $0x4] sm:$0xf]  ;;  %568 = vmatpush.bf16.xpose.msra.mxu1 %v2826_v6 }
  0x4b   : > { %v2842_v10 = vld [vmem:[%s399_s16 + $0x18] sm:$0xf]  ;;  %v2844_v11 = vld [vmem:[%s399_s16 + $0x1c] sm:$0xf]  ;;  %v2849_v12 = vld [vmem:[%s2806_s26 + $0x10] sm:$0xf] }
  0x4c   : > { %v2854_v13 = vld [vmem:[%s2806_s26 + $0x14] sm:$0xf]  ;;  %v2861_v14 = vld [vmem:[%s2806_s26 + $0x8] sm:$0xf]  ;;  %v2864_v15 = vld [vmem:[%s2806_s26 + $0xc] sm:$0xf] }
  0x4d   : > { %v2873_v16 = vld [vmem:[%s2806_s26 + $0x18] sm:$0xf]  ;;  %v2876_v17 = vld [vmem:[%s2806_s26 + $0x1c] sm:$0xf]  ;;  %vm608_vm0 = vcmask 64512   ;;  %vm1128_vm1 = vcmask 1043456  }
  0x4e   : > { %p464_p1 = scmp.lt.s32.totalorder %s2717_s5, 1  ;;  %vm758_vm2 = vcmask 1045509   ;;  %vm760_vm3 = vcmask 1046534   ;;  %vm1744_vm4 = vcmask 1046528   ;;  %vm1730_vm5 = vcmask 1040384  }
  0x4f   : > { %vm751_vm6 = vcmask 1041409   ;;  %vm752_vm7 = vcmask 1042434   ;;  %vm754_vm8 = vcmask 1043459   ;;  %vm756_vm9 = vcmask 1044484  }
  0x50   : > { %504 = vmatmul.bf16.vlgmr.msra.gmra.mxu2 %v2816_v2  ;;  %517 = vmatmul.bf16.vlgmr.msra.gmra.mxu3 %v2818_v3  ;;  %s3366_s5 = smov (!%p464_p1, %s2717_s5), 1  ;;  %vm762_vm10 = vcmask 1047559  }
  0x51   : > { %529 = vmatpush.bf16.xpose.msrb.mxu2 %v2824_v5  ;;  %542 = vmatpush.bf16.xpose.msrb.mxu3 %v2828_v7  ;;  %s3043_s9 = sshll.u32 %s3366_s5, 3 }
  0x52   : > { %924 = vmatpush.bf16.xpose.msrb.mxu0 %v2833_v8  ;;  %937 = vmatpush.bf16.xpose.msrb.mxu1 %v2836_v9  ;;  %s472_s15 = scalar_lea.vmem %s3339_s2, %s3043_s9  ;;  %s467_s28 = scalar_lea.vmem %s3337_s0, %s3043_s9 }
  0x53   : > { %556 = vmatmul.bf16.vlgmr.msra.gmra.mxu0 %v2820_v4  ;;  %569 = vmatmul.bf16.vlgmr.msra.gmra.mxu1 %v2826_v6  ;;  %s477_s20 = scalar_lea.vmem %s3346_s10, %s3043_s9 }
  0x59   : > { %581 = vmatpush.bf16.xpose.msra.mxu2 %v2842_v10  ;;  %594 = vmatpush.bf16.xpose.msra.mxu3 %v2844_v11 }
  0x5a   : > { %976 = vmatpush.bf16.xpose.msra.mxu0 %v2849_v12  ;;  %989 = vmatpush.bf16.xpose.msra.mxu1 %v2854_v13 }
  0x60   : > { %530 = vmatmul.bf16.vlgmr.msrb.gmra.mxu2 %v2824_v5  ;;  %543 = vmatmul.bf16.vlgmr.msrb.gmra.mxu3 %v2828_v7 }
  0x61   : > { %950 = vmatpush.bf16.xpose.msrb.mxu2 %v2861_v14  ;;  %963 = vmatpush.bf16.xpose.msrb.mxu3 %v2864_v15 }
  0x63   : > { %925 = vmatmul.bf16.vlgmr.msrb.gmra.mxu0 %v2833_v8  ;;  %938 = vmatmul.bf16.vlgmr.msrb.gmra.mxu1 %v2836_v9 }
  0x70   : > { %582 = vmatmul.bf16.vlgmr.msra.gmra.mxu2 %v2842_v10  ;;  %595 = vmatmul.bf16.vlgmr.msra.gmra.mxu3 %v2844_v11 }
  0x71   : > { %1002 = vmatpush.bf16.xpose.msra.mxu2 %v2873_v16  ;;  %1015 = vmatpush.bf16.xpose.msra.mxu3 %v2876_v17 }
  0x73   : > { %977 = vmatmul.bf16.vlgmr.msra.gmra.mxu0 %v2849_v12  ;;  %990 = vmatmul.bf16.vlgmr.msra.gmra.mxu1 %v2854_v13 }
  0x80   : > { %951 = vmatmul.bf16.vlgmr.msrb.gmra.mxu2 %v2861_v14  ;;  %964 = vmatmul.bf16.vlgmr.msrb.gmra.mxu3 %v2864_v15 }
  0x90   : > { %1003 = vmatmul.bf16.vlgmr.msra.gmra.mxu2 %v2873_v16  ;;  %1016 = vmatmul.bf16.vlgmr.msra.gmra.mxu3 %v2876_v17 }
  0xd0   : > { %v2888_v18 = vpop.f32.mrf.mxu0  ;;  %v2890_v19 = vpop.f32.mrf.mxu1 }
  0xd3   : > { %v2892_v20 = vpop.f32.mrf.mxu2  ;;  %v2894_v21 = vpop.f32.mrf.mxu3 }
  0xd8   : > { %v559_v22 = vpop.f32.mrf.mxu0  ;;  %v572_v23 = vpop.f32.mrf.mxu1 }
  0xdb   : > { %v507_v24 = vpop.f32.mrf.mxu2  ;;  %v520_v25 = vpop.f32.mrf.mxu3 }
  0xe0   : > { %v926_v26 = vpop.f32.mrf.mxu0  ;;  %v939_v28 = vpop.f32.mrf.mxu1 }
  0xe1   : > { %v1021_v27 = vmul.f32 0.035714287, %v926_v26  ;;  %v1022_v32 = vmul.f32 0.035714287, %v939_v28 }
  0xe3   : > { %v1029_v29 = vsel %vm608_vm0, %v1021_v27, -inf  ;;  %v2897_v30 = vpop.f32.mrf.mxu2  ;;  %v2899_v31 = vpop.f32.mrf.mxu3  ;;  %v1032_v34 = vsel %vm608_vm0, %v1022_v32, -inf }
  0xe4   : > { %1030 = vmax.xlane.f32.xlu0 %v1029_v29 }
  0xe8   : > { %v928_v33 = vpop.f32.mrf.mxu0  ;;  %v941_v35 = vpop.f32.mrf.mxu1 }
  0xeb   : > { %v533_v36 = vpop.f32.mrf.mxu2  ;;  %v546_v37 = vpop.f32.mrf.mxu3 }
  0xec   : > { %1033 = vmax.xlane.f32.xlu0 %v1032_v34 }
  0xf0   : > { %v978_v38 = vpop.f32.mrf.mxu0  ;;  %v991_v40 = vpop.f32.mrf.mxu1 }
  0xf1   : > { %v1025_v39 = vmul.f32 0.035714287, %v978_v38  ;;  %v1026_v44 = vmul.f32 0.035714287, %v991_v40 }
  0xf3   : > { %v1041_v41 = vsel %vm608_vm0, %v1025_v39, -inf  ;;  %v2903_v42 = vpop.f32.mrf.mxu2  ;;  %v2905_v43 = vpop.f32.mrf.mxu3  ;;  %v1044_v46 = vsel %vm608_vm0, %v1026_v44, -inf }
  0xf4   : > { %1042 = vmax.xlane.f32.xlu2 %v1041_v41 }
  0xf8   : > { %v980_v45 = vpop.f32.mrf.mxu0  ;;  %v993_v47 = vpop.f32.mrf.mxu1 }
  0xfb   : > { %v585_v48 = vpop.f32.mrf.mxu2  ;;  %v598_v49 = vpop.f32.mrf.mxu3 }
  0xfc   : > { %1045 = vmax.xlane.f32.xlu2 %v1044_v46 }
 0x103   : > { %v952_v50 = vpop.f32.mrf.mxu2  ;;  %v965_v51 = vpop.f32.mrf.mxu3 }
 0x104   : > { %v1023_v52 = vmul.f32 0.035714287, %v952_v50  ;;  %v1024_v54 = vmul.f32 0.035714287, %v965_v51 }
 0x106   : > { %v1035_v53 = vsel %vm608_vm0, %v1023_v52, -inf  ;;  %v1038_v57 = vsel %vm608_vm0, %v1024_v54, -inf }
 0x107   : > { %1036 = vmax.xlane.f32.xlu1 %v1035_v53 }
 0x10b   : > { %v954_v55 = vpop.f32.mrf.mxu2  ;;  %v967_v56 = vpop.f32.mrf.mxu3 }
 0x10f   : > { %1039 = vmax.xlane.f32.xlu1 %v1038_v57 }
 0x113   : > { %v1004_v58 = vpop.f32.mrf.mxu2  ;;  %v1017_v59 = vpop.f32.mrf.mxu3 }
 0x114   : > { %v1027_v60 = vmul.f32 0.035714287, %v1004_v58  ;;  %v1028_v61 = vmul.f32 0.035714287, %v1017_v59 }
 0x116   : > { %v1050_v62 = vsel %vm608_vm0, %v1028_v61, -inf  ;;  %v1047_v63 = vsel %vm608_vm0, %v1027_v60, -inf }
 0x117   : > { %1051 = vmax.xlane.f32.xlu1 %v1050_v62  ;;  %1048 = vmax.xlane.f32.xlu0 %v1047_v63 }
 0x11b   : > { %v1006_v0 = vpop.f32.mrf.mxu2  ;;  %v1019_v1 = vpop.f32.mrf.mxu3 }
 0x11c   : > { %v2937_v0 = vmul.f32 0.035714287, %v2892_v20  ;;  %v2953_v20 = vmul.f32 0.035714287, %v2899_v31  ;;  %v2968_v31 = vmul.f32 0.035714287, %v2903_v42 }
 0x157   : > { %v1031_v22 = vpop.xlane.xlu0 %1030 }
 0x158   : > { %v1053_v23 = vsub.f32 %v1021_v27, %v1031_v22 }
 0x15a   : > { %v1061_v24 = vmul.f32 1.442695, %v1053_v23 }
 0x15c   : > { %2427 = vpow2.f32 %v1061_v24  ;;  %v2950_v24 = vmul.f32 0.035714287, %v2897_v30  ;;  %v2965_v30 = vmul.f32 0.035714287, %v2890_v19  ;;  %v2980_v19 = vmul.f32 0.035714287, %v2905_v43 }
 0x15e   : > { %v630_v42 = vsel %vm608_vm0, %v2980_v19, -inf }
 0x15f   : > { %v1034_v25 = vpop.xlane.xlu0 %1033 }
 0x160   : > { %v1054_v26 = vsub.f32 %v1022_v32, %v1034_v25  ;;  %v2956_v25 = vmul.f32 0.035714287, %v2894_v21  ;;  %v2971_v21 = vmul.f32 0.035714287, %v2888_v18  ;;  %v1130_v18 = vsel %vm1128_vm1, %v2833_v8, 0 }
 0x161   : > { %1139 = vmatpush.bf16.msrb.mxu0 %v1130_v18 }
 0x162   : > { %v2912_v28 = vpop.eup %2427  ;;  %v1063_v29 = vmul.f32 1.442695, %v1054_v26  ;;  %v618_v26 = vsel %vm608_vm0, %v2953_v20, -inf }
 0x163   : > { %v1077_v33 = vsel %vm608_vm0, %v2912_v28, 0.0 }
 0x164   : > { %2429 = vpow2.f32 %v1063_v29  ;;  %1078 = vadd.xlane.f32.xlu2 %v1077_v33  ;;  %v615_v29 = vsel %vm608_vm0, %v2950_v24, -inf  ;;  %v612_v33 = vsel %vm608_vm0, %v2956_v25, -inf }
 0x167   : > { %v1043_v34 = vpop.xlane.xlu2 %1042 }
 0x168   : > { %v1057_v35 = vsub.f32 %v1025_v39, %v1043_v34  ;;  %v627_v34 = vsel %vm608_vm0, %v2968_v31, -inf }
 0x16a   : > { %v2916_v36 = vpop.eup %2429  ;;  %v1069_v37 = vmul.f32 1.442695, %v1057_v35  ;;  %v624_v35 = vsel %vm608_vm0, %v2965_v30, -inf }
 0x16b   : > { %v1080_v27 = vsel %vm608_vm0, %v2916_v36, 0.0 }
 0x16c   : > { %2431 = vpow2.f32 %v1069_v37  ;;  %1081 = vadd.xlane.f32.xlu0 %v1080_v27  ;;  %v621_v37 = vsel %vm608_vm0, %v2971_v21, -inf  ;;  %v1149_v27 = vsel %vm1128_vm1, %v2836_v9, 0  ;;  %v1187_v9 = vsel %vm1128_vm1, %v2864_v15, 0 }
 0x16d   : > { %1158 = vmatpush.bf16.msrb.mxu1 %v1149_v27  ;;  %1196 = vmatpush.bf16.msrb.mxu3 %v1187_v9  ;;  %v1244_v15 = vsel %vm1128_vm1, %v2873_v16, 0  ;;  %v2329_v16 = vld [vmem:[#allocation8 + $0x74] sm:$0xf0]  ;;  %v2327_v27 = vld [vmem:[#allocation8 + $0x64] sm:$0xf0] }
 0x16f   : > { %v1046_v40 = vpop.xlane.xlu2 %1045 }
 0x170   : > { %v1058_v46 = vsub.f32 %v1026_v44, %v1046_v40 }
 0x172   : > { %v2920_v38 = vpop.eup %2431  ;;  %v1071_v39 = vmul.f32 1.442695, %v1058_v46 }
 0x173   : > { %v1089_v32 = vsel %vm608_vm0, %v2920_v38, 0.0 }
 0x174   : > { %1090 = vadd.xlane.f32.xlu0 %v1089_v32  ;;  %v1206_v32 = vsel %vm1128_vm1, %v2849_v12, 0 }
 0x175   : > { %1215 = vmatpush.bf16.msra.mxu0 %v1206_v32  ;;  %v2326_v32 = vld [vmem:[#allocation8 + $0x64] sm:$0xf] }
 0x17a   : > { %v1037_v41 = vpop.xlane.xlu1 %1036 }
 0x17b   : > { %v1055_v45 = vsub.f32 %v1023_v52, %v1037_v41 }
 0x17d   : > { %v1065_v47 = vmul.f32 1.442695, %v1055_v45 }
 0x17f   : > { %2433 = vpow2.f32 %v1065_v47  ;;  %v1168_v47 = vsel %vm1128_vm1, %v2861_v14, 0 }
 0x180   : > { %2435 = vpow2.f32 %v1071_v39  ;;  %1177 = vmatpush.bf16.msrb.mxu2 %v1168_v47 }
 0x182   : > { %v1040_v48 = vpop.xlane.xlu1 %1039 }
 0x183   : > { %v1056_v49 = vsub.f32 %v1024_v54, %v1040_v48 }
 0x184   : > { %1253 = vmatpush.bf16.msra.mxu2 %v1244_v15 }
 0x185   : > { %v2924_v50 = vpop.eup %2433  ;;  %v1067_v51 = vmul.f32 1.442695, %v1056_v49 }
 0x186   : > { %v1083_v53 = vsel %vm608_vm0, %v2924_v50, 0.0  ;;  %v2928_v57 = vpop.eup %2435 }
 0x187   : > { %2437 = vpow2.f32 %v1067_v51  ;;  %1084 = vadd.xlane.f32.xlu1 %v1083_v53  ;;  %v1092_v54 = vsel %vm608_vm0, %v2928_v57, 0.0 }
 0x18a   : > { %v1052_v55 = vpop.xlane.xlu1 %1051  ;;  %v1049_v56 = vpop.xlane.xlu0 %1048 }
 0x18b   : > { %v1060_v52 = vsub.f32 %v1028_v61, %v1052_v55  ;;  %v1059_v44 = vsub.f32 %v1027_v60, %v1049_v56  ;;  %v609_v61 = vsel %vm608_vm0, %v2937_v0, -inf  ;;  %v1263_v56 = vsel %vm1128_vm1, %v2876_v17, 0 }
 0x18c   : > { %1272 = vmatpush.bf16.msra.mxu3 %v1263_v56 }
 0x18d   : > { %v2930_v58 = vpop.eup %2437  ;;  %v1075_v59 = vmul.f32 1.442695, %v1060_v52  ;;  %v1073_v62 = vmul.f32 1.442695, %v1059_v44 }
 0x18e   : > { %v1086_v63 = vsel %vm608_vm0, %v2930_v58, 0.0 }
 0x18f   : > { %2439 = vpow2.f32 %v1075_v59  ;;  %1093 = vadd.xlane.f32.xlu1 %v1092_v54  ;;  %1087 = vadd.xlane.f32.xlu2 %v1086_v63  ;;  %v2176_v54 = vld [vmem:[#allocation8 + $0x70] sm:$0xf]  ;;  %v2328_v63 = vld [vmem:[#allocation8 + $0x74] sm:$0xf] }
 0x190   : > { %2441 = vpow2.f32 %v1073_v62 }
 0x195   : > { %v2939_v1 = vpop.eup %2439 }
 0x196   : > { %v2941_v60 = vpop.eup %2441  ;;  %v1098_v22 = vsel %vm608_vm0, %v2939_v1, 0.0 }
 0x197   : > { %610 = vmax.xlane.f32.xlu1 %v609_v61  ;;  %1099 = vadd.xlane.f32.xlu0 %v1098_v22  ;;  %v1095_v23 = vsel %vm608_vm0, %v2941_v60, 0.0 }
 0x198   : > { %1096 = vadd.xlane.f32.xlu2 %v1095_v23 }
 0x19f   : > { %619 = vmax.xlane.f32.xlu1 %v618_v26  ;;  %616 = vmax.xlane.f32.xlu0 %v615_v29  ;;  %v2177_v26 = vor.u32 %v2329_v16, %v2176_v54  ;;  %v2178_v29 = vld [vmem:[#allocation8 + $0x78] sm:$0xf0]  ;;  %v2144_v16 = vld [vmem:[#allocation8 + $0x30] sm:$0xf] }
 0x1a0   : > { %613 = vmax.xlane.f32.xlu2 %v612_v33 }
 0x1a7   : > { %628 = vmax.xlane.f32.xlu1 %v627_v34  ;;  %625 = vmax.xlane.f32.xlu0 %v624_v35  ;;  %v2181_v35 = vor.u32 %v2328_v63, %v2178_v29  ;;  %v2321_v63 = vld [vmem:[#allocation8 + $0x34] sm:$0xf0] }
 0x1a8   : > { %622 = vmax.xlane.f32.xlu2 %v621_v37 }
 0x1b0   : > { %631 = vmax.xlane.f32.xlu2 %v630_v42 }
 0x1d7   : > { %v1079_v40 = vpop.xlane.xlu2 %1078 }
 0x1d8   : > { %2443 = vrcp.f32 %v1079_v40  ;;  %v2170_v40 = vld [vmem:[#allocation8 + $0x68] sm:$0xf0] }
 0x1de   : > { %v2444_v43 = vpop.eup %2443 }
 0x1df   : > { %v1109_v41 = vmul.f32 %v2444_v43, %v2912_v28  ;;  %v1082_v45 = vpop.xlane.xlu0 %1081  ;;  %v1225_v28 = vsel %vm1128_vm1, %v2854_v13, 0  ;;  %v2160_v43 = vld [vmem:[#allocation8 + $0x50] sm:$0xf] }
 0x1e0   : > { %2445 = vrcp.f32 %v1082_v45  ;;  %1234 = vmatpush.bf16.msra.mxu1 %v1225_v28  ;;  %v2324_v45 = vld [vmem:[#allocation8 + $0x54] sm:$0xf] }
 0x1e1   : > { %v1117_v46 = vpack.c.bf16 %v1109_v41, %v1109_v41  ;;  %v2325_v41 = vld [vmem:[#allocation8 + $0x54] sm:$0xf0] }
 0x1e2   : > { %v2161_v9 = vor.u32 %v2325_v41, %v2160_v43  ;;  %v2318_v43 = vld [vmem:[#allocation8 + $0x24] sm:$0xf]  ;;  %v2138_v41 = vld [vmem:[#allocation8 + $0x28] sm:$0xf0] }
 0x1e3   : > { %2110 = vmatmul.msk.bf16.vlgmr.msrb.gmra.mxu0 %vm608_vm0, %v1117_v46 }
 0x1e4   : > { %1383 = vmatpush.bf16.msrb.mxu0 %v2177_v26  ;;  %v2146_v26 = vld [vmem:[#allocation8 + $0x38] sm:$0xf0] }
 0x1e6   : > { %v2446_v39 = vpop.eup %2445 }
 0x1e7   : > { %v1110_v12 = vmul.f32 %v2446_v39, %v2916_v36  ;;  %v1091_v48 = vpop.xlane.xlu0 %1090 }
 0x1e8   : > { %2447 = vrcp.f32 %v1091_v48 }
 0x1e9   : > { %v1118_v49 = vpack.c.bf16 %v1110_v12, %v1110_v12  ;;  %v2162_v12 = vld [vmem:[#allocation8 + $0x58] sm:$0xf0] }
 0x1ea   : > { %v2165_v15 = vor.u32 %v2324_v45, %v2162_v12  ;;  %v2141_v45 = vor.u32 %v2318_v43, %v2138_v41  ;;  %v2130_v12 = vld [vmem:[#allocation8 + $0x18] sm:$0xf0] }
 0x1eb   : > { %2111 = vmatmul.msk.bf16.vlgmr.msrb.gmra.mxu1 %vm608_vm0, %v1118_v49 }
 0x1ec   : > { %1396 = vmatpush.bf16.msrb.mxu1 %v2181_v35 }
 0x1ee   : > { %v2448_v51 = vpop.eup %2447 }
 0x1ef   : > { %v1113_v53 = vmul.f32 %v2448_v51, %v2920_v38 }
 0x1f1   : > { %v1121_v55 = vpack.c.bf16 %v1113_v53, %v1113_v53 }
 0x1f3   : > { %2114 = vmatmul.msk.bf16.vlgmr.msra.gmra.mxu0 %vm608_vm0, %v1121_v55 }
 0x1fa   : > { %v1085_v36 = vpop.xlane.xlu1 %1084 }
 0x1fb   : > { %2449 = vrcp.f32 %v1085_v36 }
 0x201   : > { %v2450_v52 = vpop.eup %2449 }
 0x202   : > { %v1111_v13 = vmul.f32 %v2450_v52, %v2924_v50  ;;  %v1088_v44 = vpop.xlane.xlu2 %1087  ;;  %v1094_v59 = vpop.xlane.xlu1 %1093 }
 0x203   : > { %2451 = vrcp.f32 %v1088_v44 }
 0x204   : > { %v1119_v38 = vpack.c.bf16 %v1111_v13, %v1111_v13  ;;  %2453 = vrcp.f32 %v1094_v59  ;;  %v2322_v59 = vld [vmem:[#allocation8 + $0x44] sm:$0xf] }
 0x206   : > { %2112 = vmatmul.msk.bf16.vlgmr.msrb.gmra.mxu2 %vm608_vm0, %v1119_v38 }
 0x209   : > { %v2452_v62 = vpop.eup %2451 }
 0x20a   : > { %v2454_v61 = vpop.eup %2453  ;;  %v1112_v22 = vmul.f32 %v2452_v62, %v2930_v58  ;;  %v611_v23 = vpop.xlane.xlu1 %610  ;;  %v2168_v58 = vld [vmem:[#allocation8 + $0x60] sm:$0xf]  ;;  %v2154_v62 = vld [vmem:[#allocation8 + $0x48] sm:$0xf0] }
 0x20b   : > { %v1100_v17 = vpop.xlane.xlu0 %1099  ;;  %v1114_v50 = vmul.f32 %v2454_v61, %v2928_v57  ;;  %v633_v33 = vsub.f32 %v2937_v0, %v611_v23  ;;  %v1097_v34 = vpop.xlane.xlu2 %1096  ;;  %v2169_v57 = vor.u32 %v2327_v27, %v2168_v58  ;;  %v2173_v0 = vor.u32 %v2326_v32, %v2170_v40  ;;  %v2320_v61 = vld [vmem:[#allocation8 + $0x34] sm:$0xf]  ;;  %v2136_v32 = vld [vmem:[#allocation8 + $0x20] sm:$0xf] }
 0x20c   : > { %v1120_v37 = vpack.c.bf16 %v1112_v22, %v1112_v22  ;;  %2455 = vrcp.f32 %v1097_v34  ;;  %v2157_v54 = vor.u32 %v2322_v59, %v2154_v62  ;;  %v2149_v35 = vor.u32 %v2320_v61, %v2146_v26  ;;  %v2360_v59 = vld [vmem:[#allocation8 + $0x174] sm:$0xf] }
 0x20d   : > { %v1122_v42 = vpack.c.bf16 %v1114_v50, %v1114_v50  ;;  %v641_v18 = vmul.f32 1.442695, %v633_v33  ;;  %2457 = vrcp.f32 %v1100_v17  ;;  %1384 = vmatpush.bf16.msrb.mxu0 %v2169_v57  ;;  %1397 = vmatpush.bf16.msrb.mxu1 %v2173_v0  ;;  %v2145_v17 = vor.u32 %v2321_v63, %v2144_v16  ;;  %v2319_v57 = vld [vmem:[#allocation8 + $0x24] sm:$0xf0]  ;;  %v2242_v16 = vld [vmem:[#allocation8 + $0x178] sm:$0xf0] }
 0x20e   : > { %2113 = vmatmul.msk.bf16.vlgmr.msrb.gmra.mxu3 %vm608_vm0, %v1120_v37  ;;  %v2137_v0 = vor.u32 %v2319_v57, %v2136_v32  ;;  %v2245_v26 = vor.u32 %v2360_v59, %v2242_v16  ;;  %v2234_v57 = vld [vmem:[#allocation8 + $0x168] sm:$0xf0]  ;;  %v699_v59 = vunpack.c.l.bf16 %v2824_v5  ;;  %v2338_v16 = vld [vmem:[#allocation8 + $0xc4] sm:$0xf]  ;;  %v2353_v5 = vld [vmem:[#allocation8 + $0x134] sm:$0xf0] }
 0x20f   : > { %2459 = vpow2.f32 %v641_v18  ;;  %2115 = vmatmul.msk.bf16.vlgmr.msra.gmra.mxu1 %vm608_vm0, %v1122_v42 }
 0x210   : > { %1560 = vmatpush.bf16.msrb.mxu3 %v2245_v26 }
 0x211   : > { %1385 = vmatpush.bf16.msrb.mxu0 %v2161_v9  ;;  %1398 = vmatpush.bf16.msrb.mxu1 %v2165_v15 }
 0x212   : > { %v2456_v46 = vpop.eup %2455  ;;  %v620_v47 = vpop.xlane.xlu1 %619 }
 0x213   : > { %v617_v39 = vpop.xlane.xlu0 %616  ;;  %v1115_v48 = vmul.f32 %v2456_v46, %v2941_v60  ;;  %v636_v49 = vsub.f32 %v2953_v20, %v620_v47  ;;  %v614_v28 = vpop.xlane.xlu2 %613  ;;  %v2323_v20 = vld [vmem:[#allocation8 + $0x44] sm:$0xf0]  ;;  %v2128_v46 = vld [vmem:[#allocation8 + $0x10] sm:$0xf]  ;;  %v2317_v47 = vld [vmem:[#allocation8 + $0x14] sm:$0xf0] }
 0x214   : > { %v635_v51 = vsub.f32 %v2950_v24, %v617_v39  ;;  %v2458_v53 = vpop.eup %2457  ;;  %v634_v55 = vsub.f32 %v2956_v25, %v614_v28  ;;  %v2152_v24 = vld [vmem:[#allocation8 + $0x40] sm:$0xf]  ;;  %v2316_v39 = vld [vmem:[#allocation8 + $0x14] sm:$0xf]  ;;  %v2129_v9 = vor.u32 %v2317_v47, %v2128_v46  ;;  %v2224_v46 = vld [vmem:[#allocation8 + $0x150] sm:$0xf] }
 0x215   : > { %v3017_v36 = vpop.eup %2459  ;;  %v1123_v56 = vpack.c.bf16 %v1115_v48, %v1115_v48  ;;  %v647_v52 = vmul.f32 1.442695, %v636_v49  ;;  %v1116_v25 = vmul.f32 %v2458_v53, %v2939_v1  ;;  %v2153_v38 = vor.u32 %v2323_v20, %v2152_v24  ;;  %1399 = vmatpush.bf16.msrb.mxu1 %v2157_v54  ;;  %v2120_v48 = vld [vmem:[#allocation8] sm:$0xf]  ;;  %v2315_v49 = vld [vmem:[#allocation8 + $0x4] sm:$0xf0] }
 0x216   : > { %v645_v13 = vmul.f32 1.442695, %v635_v51  ;;  %v643_v44 = vmul.f32 1.442695, %v634_v55  ;;  %v657_v60 = vsel %vm608_vm0, %v3017_v36, 0.0  ;;  %v2121_v62 = vor.u32 %v2315_v49, %v2120_v48 }
 0x217   : > { %2461 = vpow2.f32 %v647_v52  ;;  %2116 = vmatmul.msk.bf16.vlgmr.msra.gmra.mxu2 %vm608_vm0, %v1123_v56  ;;  %658 = vadd.xlane.f32.xlu0 %v657_v60  ;;  %v1124_v33 = vpack.c.bf16 %v1116_v25, %v1116_v25  ;;  %v2314_v51 = vld [vmem:[#allocation8 + $0x4] sm:$0xf]  ;;  %v2122_v53 = vld [vmem:[#allocation8 + $0x8] sm:$0xf0]  ;;  %v2304_v55 = vld [vmem:[#allocation8 + $0xf0] sm:$0xf]  ;;  %v2133_v56 = vor.u32 %v2316_v39, %v2130_v12 }
 0x218   : > { %2463 = vpow2.f32 %v643_v44  ;;  %1386 = vmatpush.bf16.msrb.mxu0 %v2153_v38  ;;  %v2345_v52 = vld [vmem:[#allocation8 + $0xf4] sm:$0xf0]  ;;  %v2306_v44 = vld [vmem:[#allocation8 + $0xf8] sm:$0xf0]  ;;  %v2240_v24 = vld [vmem:[#allocation8 + $0x170] sm:$0xf] }
 0x219   : > { %2465 = vpow2.f32 %v645_v13  ;;  %1400 = vmatpush.bf16.msrb.mxu1 %v2149_v35  ;;  %v2344_v13 = vld [vmem:[#allocation8 + $0xf4] sm:$0xf]  ;;  %v2361_v20 = vld [vmem:[#allocation8 + $0x174] sm:$0xf0] }
 0x21a   : > { %v629_v22 = vpop.xlane.xlu1 %628  ;;  %v2241_v54 = vor.u32 %v2361_v20, %v2240_v24  ;;  %v2309_v35 = vor.u32 %v2344_v13, %v2306_v44  ;;  %v2357_v47 = vld [vmem:[#allocation8 + $0x154] sm:$0xf0]  ;;  %v2356_v39 = vld [vmem:[#allocation8 + $0x154] sm:$0xf]  ;;  %v701_v13 = vunpack.c.l.bf16 %v2820_v4  ;;  %v2354_v24 = vld [vmem:[#allocation8 + $0x144] sm:$0xf] }
 0x21b   : > { %v626_v23 = vpop.xlane.xlu0 %625  ;;  %v639_v29 = vsub.f32 %v2968_v31, %v629_v22  ;;  %v623_v1 = vpop.xlane.xlu2 %622  ;;  %v698_v22 = vunpack.c.l.bf16 %v2818_v3  ;;  %v697_v3 = vunpack.c.l.bf16 %v2816_v2  ;;  %v2288_v2 = vld [vmem:[#allocation8 + $0xd0] sm:$0xf]  ;;  %v2340_v49 = vld [vmem:[#allocation8 + $0xd4] sm:$0xf]  ;;  %v2218_v20 = vld [vmem:[#allocation8 + $0x148] sm:$0xf0] }
 0x21c   : > { %v638_v50 = vsub.f32 %v2965_v30, %v626_v23  ;;  %v637_v34 = vsub.f32 %v2971_v21, %v623_v1  ;;  %1387 = vmatpush.bf16.msrb.mxu0 %v2145_v17  ;;  %v3064_v23 = vld [vmem:[%s3341_s4] ss:$0 sm:$0xff]  ;;  %v2305_v17 = vor.u32 %v2345_v52, %v2304_v55  ;;  %1531 = vmatpush.bf16.msrb.mxu2 %v2241_v54 }
 0x21d   : > { %v3030_v37 = vpop.eup %2461  ;;  %v653_v42 = vmul.f32 1.442695, %v639_v29  ;;  %1401 = vmatpush.bf16.msrb.mxu1 %v2141_v45  ;;  %v3066_v29 = vld [vmem:[%s472_s15] sm:$0xff]  ;;  %v2341_v45 = vld [vmem:[#allocation8 + $0xd4] sm:$0xf0]  ;;  %v709_v12 = vmul.f32 %v3064_v23, %v697_v3  ;;  %v713_v26 = vmul.f32 %v3064_v23, %v701_v13 }
 0x21e   : > { %v651_v18 = vmul.f32 1.442695, %v638_v50  ;;  %v3032_v58 = vpop.eup %2463  ;;  %v649_v27 = vmul.f32 1.442695, %v637_v34  ;;  %2117 = vmatmul.msk.bf16.vlgmr.msra.gmra.mxu3 %vm608_vm0, %v1124_v33  ;;  %v666_v31 = vsel %vm608_vm0, %v3030_v37, 0.0  ;;  %v2125_v50 = vor.u32 %v2314_v51, %v2122_v53 }
 0x21f   : > { %v3037_v30 = vpop.eup %2465  ;;  %2467 = vpow2.f32 %v653_v42  ;;  %667 = vadd.xlane.f32.xlu0 %v666_v31  ;;  %v660_v21 = vsel %vm608_vm0, %v3032_v58, 0.0  ;;  %v2296_v33 = vld [vmem:[#allocation8 + $0xe0] sm:$0xf]  ;;  %v2343_v34 = vld [vmem:[#allocation8 + $0xe4] sm:$0xf0]  ;;  %v2225_v53 = vor.u32 %v2357_v47, %v2224_v46  ;;  %v2289_v44 = vor.u32 %v2341_v45, %v2288_v2 }
 0x220   : > { %2469 = vpow2.f32 %v649_v27  ;;  %661 = vadd.xlane.f32.xlu1 %v660_v21  ;;  %v663_v40 = vsel %vm608_vm0, %v3037_v30, 0.0  ;;  %1388 = vmatpush.bf16.msrb.mxu0 %v2137_v0  ;;  %v2232_v42 = vld [vmem:[#allocation8 + $0x160] sm:$0xf]  ;;  %v2358_v27 = vld [vmem:[#allocation8 + $0x164] sm:$0xf]  ;;  %v710_v0 = vmul.f32 %v3064_v23, %v698_v22  ;;  %v2297_v43 = vor.u32 %v2343_v34, %v2296_v33 }
 0x221   : > { %2471 = vpow2.f32 %v651_v18  ;;  %664 = vadd.xlane.f32.xlu2 %v663_v40  ;;  %1402 = vmatpush.bf16.msrb.mxu1 %v2133_v56  ;;  %v2359_v18 = vld [vmem:[#allocation8 + $0x164] sm:$0xf0]  ;;  %v2342_v31 = vld [vmem:[#allocation8 + $0xe4] sm:$0xf]  ;;  %v2298_v21 = vld [vmem:[#allocation8 + $0xe8] sm:$0xf0]  ;;  %v1286_v40 = vpack.c.bf16 %v3066_v29, %v3066_v29  ;;  %v2237_v41 = vor.u32 %v2358_v27, %v2234_v57  ;;  %v2221_v22 = vor.u32 %v2354_v24, %v2218_v20 }
 0x222   : > { %v2233_v32 = vor.u32 %v2359_v18, %v2232_v42  ;;  %v2301_v48 = vor.u32 %v2342_v31, %v2298_v21  ;;  %v2290_v51 = vld [vmem:[#allocation8 + $0xd8] sm:$0xf0]  ;;  %v2355_v56 = vld [vmem:[#allocation8 + $0x144] sm:$0xf0]  ;;  %v711_v34 = vmul.f32 %v3064_v23, %v699_v59  ;;  %v2272_v3 = vld [vmem:[#allocation8 + $0xb0] sm:$0xf] }
 0x223   : > { %v632_v28 = vpop.xlane.xlu2 %631  ;;  %1561 = vmatpush.bf16.msrb.mxu3 %v2237_v41  ;;  %v2293_v54 = vor.u32 %v2340_v49, %v2290_v51  ;;  %v2210_v33 = vld [vmem:[#allocation8 + $0x138] sm:$0xf0]  ;;  %v2336_v18 = vld [vmem:[#allocation8 + $0xb4] sm:$0xf]  ;;  %v2264_v45 = vld [vmem:[#allocation8 + $0xa0] sm:$0xf] }
 0x224   : > { %v640_v15 = vsub.f32 %v2980_v19, %v632_v28  ;;  %1389 = vmatpush.bf16.msrb.mxu0 %v2129_v9  ;;  %v2226_v9 = vld [vmem:[#allocation8 + $0x158] sm:$0xf0]  ;;  %1532 = vmatpush.bf16.msrb.mxu2 %v2233_v32  ;;  %v704_v32 = vunpack.c.l.bf16 %v2844_v11  ;;  %v2335_v46 = vld [vmem:[#allocation8 + $0xa4] sm:$0xf0]  ;;  %v2334_v11 = vld [vmem:[#allocation8 + $0xa4] sm:$0xf] }
 0x225   : > { %v3050_v60 = vpop.eup %2467  ;;  %1403 = vmatpush.bf16.msrb.mxu1 %v2125_v50  ;;  %v2229_v55 = vor.u32 %v2356_v39, %v2226_v9  ;;  %v2352_v50 = vld [vmem:[#allocation8 + $0x134] sm:$0xf]  ;;  %v2274_v27 = vld [vmem:[#allocation8 + $0xb8] sm:$0xf0]  ;;  %v2265_v39 = vor.u32 %v2335_v46, %v2264_v45  ;;  %v2266_v9 = vld [vmem:[#allocation8 + $0xa8] sm:$0xf0] }
 0x226   : > { %v3052_v25 = vpop.eup %2469  ;;  %v655_v38 = vmul.f32 1.442695, %v640_v15  ;;  %v675_v19 = vsel %vm608_vm0, %v3050_v60, 0.0  ;;  %v2216_v15 = vld [vmem:[#allocation8 + $0x140] sm:$0xf]  ;;  %v2213_v21 = vor.u32 %v2352_v50, %v2210_v33  ;;  %v716_v41 = vmul.f32 %v3064_v23, %v704_v32 }
 0x227   : > { %v3056_v63 = vpop.eup %2471  ;;  %676 = vadd.xlane.f32.xlu0 %v675_v19  ;;  %v669_v61 = vsel %vm608_vm0, %v3052_v25, 0.0  ;;  %v2339_v19 = vld [vmem:[#allocation8 + $0xc4] sm:$0xf0]  ;;  %1562 = vmatpush.bf16.msrb.mxu3 %v2229_v55  ;;  %v2217_v4 = vor.u32 %v2355_v56, %v2216_v15  ;;  %v2350_v49 = vld [vmem:[#allocation8 + $0x124] sm:$0xf]  ;;  %v861_v56 = vunpack.c.l.bf16 %v2833_v8  ;;  %v871_v8 = vrot.slane %v3066_v29, 2 }
 0x228   : > { %2473 = vpow2.f32 %v655_v38  ;;  %670 = vadd.xlane.f32.xlu1 %v669_v61  ;;  %v672_v1 = vsel %vm608_vm0, %v3056_v63, 0.0  ;;  %1390 = vmatpush.bf16.msrb.mxu0 %v2121_v62  ;;  %v2280_v38 = vld [vmem:[#allocation8 + $0xc0] sm:$0xf]  ;;  %v700_v62 = vunpack.c.l.bf16 %v2828_v7  ;;  %v2282_v61 = vld [vmem:[#allocation8 + $0xc8] sm:$0xf0] }
 0x229   : > { %673 = vadd.xlane.f32.xlu2 %v672_v1  ;;  %1698 = vmatpush.bf16.msra.mxu1 %v2309_v35  ;;  %v2281_v1 = vor.u32 %v2339_v19, %v2280_v38  ;;  %v2337_v7 = vld [vmem:[#allocation8 + $0xb4] sm:$0xf0]  ;;  %v2285_v42 = vor.u32 %v2338_v16, %v2282_v61  ;;  %v2256_v55 = vld [vmem:[#allocation8 + $0x90] sm:$0xf]  ;;  %v2332_v13 = vld [vmem:[#allocation8 + $0x94] sm:$0xf] }
 0x22a   : > { %1404 = vmatmul.bf16.vlgmr.msrb.gmra.mxu1 %v1286_v40  ;;  %1533 = vmatpush.bf16.msrb.mxu2 %v2225_v53  ;;  %v712_v35 = vmul.f32 %v3064_v23, %v700_v62  ;;  %v2273_v57 = vor.u32 %v2337_v7, %v2272_v3  ;;  %v2202_v53 = vld [vmem:[#allocation8 + $0x128] sm:$0xf0]  ;;  %v2333_v15 = vld [vmem:[#allocation8 + $0x94] sm:$0xf0]  ;;  %v2192_v24 = vld [vmem:[#allocation8 + $0x110] sm:$0xf]  ;;  %v863_v7 = vunpack.c.l.bf16 %v2861_v14 }
 0x22b   : > { %1391 = vmatmul.bf16.vlgmr.msrb.gmra.mxu0 %v1286_v40  ;;  %1563 = vmatpush.bf16.msrb.mxu3 %v2221_v22  ;;  %v702_v40 = vunpack.c.l.bf16 %v2826_v6  ;;  %v877_v6 = vperm.slane %v3066_v29, 0  ;;  %v2349_v59 = vld [vmem:[#allocation8 + $0x114] sm:$0xf0]  ;;  %v2348_v38 = vld [vmem:[#allocation8 + $0x114] sm:$0xf] }
 0x22c   : > { %1669 = vmatpush.bf16.msra.mxu0 %v2305_v17  ;;  %v2208_v17 = vld [vmem:[#allocation8 + $0x130] sm:$0xf]  ;;  %v2194_v19 = vld [vmem:[#allocation8 + $0x118] sm:$0xf0]  ;;  %v2193_v62 = vor.u32 %v2349_v59, %v2192_v24  ;;  %v2248_v61 = vld [vmem:[#allocation8 + $0x80] sm:$0xf] }
 0x22d   : > { %1699 = vmatpush.bf16.msra.mxu1 %v2301_v48  ;;  %v2209_v31 = vor.u32 %v2353_v5, %v2208_v17  ;;  %v714_v2 = vmul.f32 %v3064_v23, %v702_v40  ;;  %v2351_v48 = vld [vmem:[#allocation8 + $0x124] sm:$0xf0]  ;;  %v893_v16 = vmul.f32 %v877_v6, %v861_v56  ;;  %v2330_v17 = vld [vmem:[#allocation8 + $0x84] sm:$0xf]  ;;  %v2184_v5 = vld [vmem:[#allocation8 + $0x100] sm:$0xf] }
 0x22e   : > { %v3075_v28 = vpop.eup %2473  ;;  %1534 = vmatpush.bf16.msrb.mxu2 %v2217_v4  ;;  %v2331_v4 = vld [vmem:[#allocation8 + $0x84] sm:$0xf0]  ;;  %v2186_v3 = vld [vmem:[#allocation8 + $0x108] sm:$0xf0]  ;;  %v2426_v45 = vld [vmem:[#allocation2] ss:$0 sm:$0xff] }
 0x22f   : > { %719 = vadd.xlane.f32.xlu0 %v710_v0  ;;  %v678_v52 = vsel %vm608_vm0, %v3075_v28, 0.0  ;;  %v703_v0 = vunpack.c.l.bf16 %v2842_v10  ;;  %1564 = vmatpush.bf16.msrb.mxu3 %v2213_v21  ;;  %v2269_v10 = vor.u32 %v2334_v11, %v2266_v9  ;;  %v2249_v22 = vor.u32 %v2331_v4, %v2248_v61  ;;  %v2347_v50 = vld [vmem:[#allocation8 + $0x104] sm:$0xf0] }
 0x230   : > { %1670 = vmatpush.bf16.msra.mxu0 %v2297_v43  ;;  %679 = vadd.xlane.f32.xlu1 %v678_v52  ;;  %v2277_v43 = vor.u32 %v2336_v18, %v2274_v27  ;;  %v2205_v52 = vor.u32 %v2350_v49, %v2202_v53  ;;  %v2185_v33 = vor.u32 %v2347_v50, %v2184_v5  ;;  %v2636_v27 = vmov 0  }
 0x231   : > { %717 = vadd.xlane.f32.xlu2 %v709_v12  ;;  %1700 = vmatpush.bf16.msra.mxu1 %v2293_v54  ;;  %v715_v47 = vmul.f32 %v3064_v23, %v703_v0  ;;  %v2200_v12 = vld [vmem:[#allocation8 + $0x120] sm:$0xf]  ;;  %v2257_v23 = vor.u32 %v2333_v15, %v2256_v55  ;;  %v2197_v54 = vor.u32 %v2348_v38, %v2194_v19  ;;  %v870_v21 = vrot.slane %v3066_v29, 1  ;;  %v2425_v0 = vld [vmem:[#allocation3] ss:$0 sm:$0xff] }
 0x232   : > { %1535 = vmatpush.bf16.msrb.mxu2 %v2209_v31  ;;  %v2201_v51 = vor.u32 %v2351_v48, %v2200_v12  ;;  %2423 = vset.pattern.permute.xlu1 %v2636_v27  ;;  %v2492_v48 = vld [vmem:[%s2806_s26 + $0xc] sm:$0xf] }
 0x233   : > { %1565 = vmatpush.bf16.msrb.mxu3 %v2205_v52  ;;  %2422 = vset.pattern.permute.xlu0 %v2636_v27  ;;  %v878_v32 = vperm.slane %v870_v21, 0  ;;  %v864_v49 = vunpack.c.l.bf16 %v2492_v48 }
 0x234   : > { %1671 = vmatpush.bf16.msra.mxu0 %v2289_v44  ;;  %v2258_v44 = vld [vmem:[#allocation8 + $0x98] sm:$0xf0] }
 0x235   : > { %1701 = vmatpush.bf16.msra.mxu1 %v2285_v42  ;;  %v2261_v20 = vor.u32 %v2332_v13, %v2258_v44 }
 0x236   : > { %1536 = vmatpush.bf16.msrb.mxu2 %v2201_v51 }
 0x237   : > { %725 = vadd.xlane.f32.xlu0 %v713_v26  ;;  %v2250_v26 = vld [vmem:[#allocation8 + $0x88] sm:$0xf0]  ;;  %1566 = vmatpush.bf16.msrb.mxu3 %v2197_v54 }
 0x238   : > { %1672 = vmatpush.bf16.msra.mxu0 %v2281_v1  ;;  %721 = vadd.xlane.f32.xlu1 %v711_v34  ;;  %v2253_v1 = vor.u32 %v2330_v17, %v2250_v26  ;;  %v2346_v34 = vld [vmem:[#allocation8 + $0x104] sm:$0xf]  ;;  %v741_v26 = vlaneseq }
 0x239   : > { %723 = vadd.xlane.f32.xlu2 %v712_v35  ;;  %1702 = vmatpush.bf16.msra.mxu1 %v2277_v43  ;;  %v879_v35 = vperm.slane %v871_v8, 0  ;;  %v2189_v42 = vor.u32 %v2346_v34, %v2186_v3 }
 0x23a   : > { %1537 = vmatpush.bf16.msrb.mxu2 %v2193_v62  ;;  %v874_v62 = vrot.slane %v3066_v29, 5 }
 0x23b   : > { %1567 = vmatpush.bf16.msrb.mxu3 %v2189_v42  ;;  %v895_v18 = vmul.f32 %v879_v35, %v863_v7 }
 0x23c   : > { %1673 = vmatpush.bf16.msra.mxu0 %v2273_v57 }
 0x23d   : > { %1703 = vmatpush.bf16.msra.mxu1 %v2269_v10 }
 0x23e   : > { %1538 = vmatpush.bf16.msrb.mxu2 %v2185_v33  ;;  %v3114_v33 = vand.u32 127, %v741_v26 }
 0x23f   : > { %731 = vadd.xlane.f32.xlu0 %v716_v41 }
 0x240   : > { %1674 = vmatpush.bf16.msra.mxu0 %v2265_v39  ;;  %727 = vadd.xlane.f32.xlu1 %v714_v2  ;;  %v2491_v39 = vld [vmem:[%s2806_s26 + $0x4] sm:$0xf] }
 0x241   : > { %729 = vadd.xlane.f32.xlu2 %v715_v47  ;;  %1704 = vmatpush.bf16.msra.mxu1 %v2261_v20  ;;  %v862_v9 = vunpack.c.l.bf16 %v2491_v39 }
 0x243   : > { %v894_v10 = vmul.f32 %v878_v32, %v862_v9 }
 0x244   : > { %1675 = vmatpush.bf16.msra.mxu0 %v2257_v23 }
 0x245   : > { %1705 = vmatpush.bf16.msra.mxu1 %v2253_v1 }
 0x248   : > { %1676 = vmatpush.bf16.msra.mxu0 %v2249_v22  ;;  %901 = vadd.xlane.f32.xlu1 %v893_v16  ;;  %v873_v16 = vrot.slane %v3066_v29, 4  ;;  %v3109_v22 = vperm.slane %v874_v62, 0 }
 0x249   : > { %903 = vadd.xlane.f32.xlu2 %v894_v10 }
 0x24a   : > { %v3111_v1 = vperm.slane %v873_v16, 0 }
 0x250   : > { %905 = vadd.xlane.f32.xlu1 %v895_v18 }
 0x253   : > { %850 = vperm.xlu0 %2422, %v2426_v45  }
 0x260   : > { %v1141_v31 = vpop.f32.mrf.mxu0 }
 0x261   : > { %v1278_v14 = vmul.f32 %v1141_v31, %v877_v6  ;;  %v872_v6 = vrot.slane %v3066_v29, 3 }
 0x263   : > { %v880_v12 = vperm.slane %v872_v6, 0 }
 0x265   : > { %v896_v51 = vmul.f32 %v880_v12, %v864_v49 }
 0x267   : > { %907 = vadd.xlane.f32.xlu2 %v896_v51 }
 0x268   : > { %v1143_v57 = vpop.f32.mrf.mxu0  ;;  %v1160_v40 = vpop.f32.mrf.mxu1 }
 0x269   : > { %v1279_v43 = vmul.f32 %v1160_v40, %v878_v32  ;;  %v1409_v41 = vpack.c.bf16 %v1160_v40, %v1141_v31  ;;  %1883 = vperm.xlu1 %2423, %v2425_v0   ;;  %v876_v0 = vrot.slane %v3066_v29, 7 }
 0x26b   : > { %v1430_v2 = vpack.c.bf16 %v1279_v43, %v1278_v14  ;;  %1677 = vmatmul.bf16.vlgmr.msra.gmra.mxu0 %v1409_v41  ;;  %1706 = vmatmul.bf16.vlgmr.msra.gmra.mxu1 %v1409_v41  ;;  %v3128_v39 = vperm.slane %v876_v0, 0 }
 0x26d   : > { %1539 = vmatmul.bf16.vlgmr.msrb.gmra.mxu2 %v1430_v2  ;;  %1568 = vmatmul.bf16.vlgmr.msrb.gmra.mxu3 %v1430_v2  ;;  %v875_v2 = vrot.slane %v3066_v29, 6 }
 0x26f   : > { %v3132_v49 = vperm.slane %v875_v2, 0  ;;  %v1795_v2 = vld [vmem:[%s3344_s7] sm:$0x3] }
 0x270   : > { %v1162_v46 = vpop.f32.mrf.mxu1  ;;  %v1217_v11 = vpop.f32.mrf.mxu0 }
 0x271   : > { %v1282_v3 = vmul.f32 %v1217_v11, %v3111_v1 }
 0x278   : > { %v1219_v47 = vpop.f32.mrf.mxu0 }
 0x289   : > { %v1179_v53 = vpop.f32.mrf.mxu2 }
 0x28a   : > { %v659_v55 = vpop.xlane.xlu0 %658  ;;  %v1280_v23 = vmul.f32 %v1179_v53, %v879_v35 }
 0x28b   : > { %2475 = vrcp.f32 %v659_v55 }
 0x28c   : > { %v1236_v15 = vpop.f32.mrf.mxu1 }
 0x28d   : > { %v1283_v5 = vmul.f32 %v1236_v15, %v3109_v22  ;;  %v1411_v42 = vpack.c.bf16 %v1236_v15, %v1217_v11 }
 0x28f   : > { %v1432_v31 = vpack.c.bf16 %v1283_v5, %v1282_v3 }
 0x291   : > { %v1181_v56 = vpop.f32.mrf.mxu2  ;;  %v1198_v52 = vpop.f32.mrf.mxu3 }
 0x292   : > { %v1281_v13 = vmul.f32 %v1198_v52, %v880_v12  ;;  %v668_v44 = vpop.xlane.xlu0 %667  ;;  %v1410_v24 = vpack.c.bf16 %v1198_v52, %v1179_v53  ;;  %v2476_v34 = vpop.eup %2475 }
 0x293   : > { %v662_v20 = vpop.xlane.xlu1 %661  ;;  %v689_v32 = vmul.f32 %v2476_v34, %v3017_v36 }
 0x294   : > { %v3103_v59 = vpop.xlane.xlu2 %664  ;;  %v1238_v38 = vpop.f32.mrf.mxu1  ;;  %1682 = vmatmul.bf16.gmra.mxu0 %v1410_v24  ;;  %1711 = vmatmul.bf16.gmra.mxu1 %v1410_v24  ;;  %v1431_v19 = vpack.c.bf16 %v1281_v13, %v1280_v23 }
 0x296   : > { %1544 = vmatmul.bf16.gmra.mxu2 %v1431_v19  ;;  %1573 = vmatmul.bf16.gmra.mxu3 %v1431_v19 }
 0x299   : > { %v1200_v54 = vpop.f32.mrf.mxu3 }
 0x29a   : > { %v3107_v8 = vpop.f32.mrf.mxu2  ;;  %v677_v61 = vpop.xlane.xlu0 %676 }
 0x29b   : > { %v671_v4 = vpop.xlane.xlu1 %670  ;;  %v1284_v23 = vmul.f32 %v3107_v8, %v3132_v49 }
 0x29c   : > { %v674_v17 = vpop.xlane.xlu2 %673  ;;  %2477 = vrcp.f32 %v671_v4 }
 0x29d   : > { %2479 = vrcp.f32 %v668_v44 }
 0x29e   : > { %2481 = vrcp.f32 %v662_v20 }
 0x29f   : > { %2483 = vrcp.f32 %v674_v17 }
 0x2a0   : > { %2485 = vrcp.f32 %v677_v61 }
 0x2a1   : > { %v1274_v50 = vpop.f32.mrf.mxu3  ;;  %2487 = vrcp.f32 %v3103_v59 }
 0x2a2   : > { %v1257_v7 = vpop.f32.mrf.mxu2  ;;  %v720_v35 = vpop.xlane.xlu0 %719  ;;  %v1285_v55 = vmul.f32 %v1274_v50, %v3128_v39  ;;  %v1412_v13 = vpack.c.bf16 %v1274_v50, %v3107_v8 }
 0x2a3   : > { %v3117_v18 = vpop.xlane.xlu1 %679  ;;  %v2478_v40 = vpop.eup %2477  ;;  %v744_v51 = vperm.slane %v720_v35, %v3114_v33 }
 0x2a4   : > { %v718_v27 = vpop.xlane.xlu2 %717  ;;  %1687 = vmatmul.bf16.gmra.mxu0 %v1411_v42  ;;  %1716 = vmatmul.bf16.gmra.mxu1 %v1411_v42  ;;  %v2480_v41 = vpop.eup %2479  ;;  %v693_v36 = vmul.f32 %v2478_v40, %v3052_v25  ;;  %v1433_v59 = vpack.c.bf16 %v1285_v55, %v1284_v23  ;;  %2489 = vrcp.f32 %v3117_v18 }
 0x2a5   : > { %v743_v21 = vperm.slane %v718_v27, %v3114_v33  ;;  %v692_v6 = vmul.f32 %v2480_v41, %v3030_v37  ;;  %v2482_v48 = vpop.eup %2481 }
 0x2a6   : > { %1549 = vmatmul.bf16.gmra.mxu2 %v1432_v31  ;;  %1578 = vmatmul.bf16.gmra.mxu3 %v1432_v31  ;;  %v2484_v15 = vpop.eup %2483  ;;  %v690_v37 = vmul.f32 %v2482_v48, %v3032_v58  ;;  %v1833_v48 = vld [vmem:[%s3345_s8] sm:$0x3] }
 0x2a7   : > { %v814_v57 = vmul.f32 %v743_v21, %v689_v32  ;;  %v1405_v29 = vpop.f32.mrf.mxu1  ;;  %v2486_v52 = vpop.eup %2485  ;;  %v694_v62 = vmul.f32 %v2484_v15, %v3056_v63  ;;  %v2493_v63 = vld [vmem:[%s2806_s26 + $0x14] sm:$0xf]  ;;  %v2494_v32 = vld [vmem:[%s2806_s26 + $0x10] sm:$0xf] }
 0x2a8   : > { %v3126_v47 = vpop.f32.mrf.mxu0  ;;  %v815_v24 = vmul.f32 %v744_v51, %v690_v37  ;;  %v695_v54 = vmul.f32 %v2486_v52, %v3050_v60  ;;  %v2488_v61 = vpop.eup %2487  ;;  %v866_v50 = vunpack.c.l.bf16 %v2493_v63  ;;  %v3161_v0 = vrot.slane %v1405_v29, 7 }
 0x2a9   : > { %v822_v14 = vsel %vm608_vm0, %v814_v57, 0.0  ;;  %v1276_v43 = vpop.f32.mrf.mxu3  ;;  %v691_v34 = vmul.f32 %v2488_v61, %v3037_v30  ;;  %v865_v57 = vunpack.c.l.bf16 %v2494_v32  ;;  %v3187_v29 = vperm.slane %v1795_v2, 1 }
 0x2aa   : > { %823 = vadd.xlane.f32.xlu1 %v822_v14  ;;  %v726_v45 = vpop.xlane.xlu0 %725  ;;  %v825_v17 = vsel %vm608_vm0, %v815_v24, 0.0  ;;  %v898_v35 = vmul.f32 %v3109_v22, %v866_v50  ;;  %v2490_v42 = vpop.eup %2489  ;;  %v3166_v22 = vsel %vm758_vm2, %v3126_v47, %v3161_v0  ;;  %v3175_v14 = vsel %vm1744_vm4, %v3161_v0, %v3126_v47 }
 0x2ab   : > { %v722_v46 = vpop.xlane.xlu1 %721  ;;  %v747_v11 = vperm.slane %v726_v45, %v3114_v33  ;;  %v696_v31 = vmul.f32 %v2490_v42, %v3075_v28  ;;  %v897_v30 = vmul.f32 %v3111_v1, %v865_v57  ;;  %v3171_v28 = vsel %vm760_vm3, %v3126_v47, %v3161_v0 }
 0x2ac   : > { %v724_v9 = vpop.xlane.xlu2 %723  ;;  %v745_v26 = vperm.slane %v722_v46, %v3114_v33  ;;  %v1731_v43 = vsel %vm1730_vm5, %v3126_v47, %v3161_v0  ;;  %v3194_v37 = vperm.slane %v1833_v48, 0  ;;  %v3196_v52 = vperm.slane %v1833_v48, 1 }
 0x2ad   : > { %v746_v10 = vperm.slane %v724_v9, %v3114_v33  ;;  %v818_v12 = vmul.f32 %v747_v11, %v693_v36  ;;  %v1747_v45 = vperm.slane %v1731_v43, 0  ;;  %v1748_v46 = vperm.slane %v1731_v43, 1 }
 0x2ae   : > { %v816_v7 = vmul.f32 %v745_v26, %v691_v34  ;;  %v1732_v9 = vsel %vm751_vm6, %v3126_v47, %v3161_v0 }
 0x2af   : > { %v817_v53 = vmul.f32 %v746_v10, %v692_v6  ;;  %v834_v25 = vsel %vm608_vm0, %v818_v12, 0.0  ;;  %v1407_v16 = vpop.f32.mrf.mxu1  ;;  %v3185_v6 = vperm.slane %v1795_v2, 0 }
 0x2b0   : > { %835 = vadd.xlane.f32.xlu2 %v834_v25  ;;  %v1394_v20 = vpop.f32.mrf.mxu0  ;;  %v828_v27 = vsel %vm608_vm0, %v816_v7, 0.0  ;;  %v1733_v25 = vrot.slane %v1732_v9, 1 }
 0x2b1   : > { %v831_v56 = vsel %vm608_vm0, %v817_v53, 0.0 }
 0x2b2   : > { %832 = vadd.xlane.f32.xlu1 %v831_v56  ;;  %v732_v3 = vpop.xlane.xlu0 %731  ;;  %v1749_v20 = vperm.slane %v1733_v25, 0 }
 0x2b3   : > { %v728_v44 = vpop.xlane.xlu1 %727  ;;  %v750_v18 = vperm.slane %v732_v3, %v3114_v33 }
 0x2b4   : > { %v748_v38 = vperm.slane %v728_v44, %v3114_v33  ;;  %v730_v19 = vpop.xlane.xlu2 %729  ;;  %1692 = vmatmul.bf16.gmra.mxu0 %v1412_v13  ;;  %1721 = vmatmul.bf16.gmra.mxu1 %v1412_v13 }
 0x2b5   : > { %v749_v58 = vperm.slane %v730_v19, %v3114_v33  ;;  %v821_v21 = vmul.f32 %v750_v18, %v696_v31 }
 0x2b6   : > { %1554 = vmatmul.bf16.gmra.mxu2 %v1433_v59  ;;  %1583 = vmatmul.bf16.gmra.mxu3 %v1433_v59  ;;  %v819_v8 = vmul.f32 %v748_v38, %v694_v62  ;;  %v1750_v38 = vperm.slane %v1733_v25, 1 }
 0x2b7   : > { %v820_v4 = vmul.f32 %v749_v58, %v695_v54  ;;  %v843_v40 = vsel %vm608_vm0, %v821_v21, 0.0 }
 0x2b8   : > { %v837_v5 = vsel %vm608_vm0, %v819_v8, 0.0  ;;  %826 = vadd.xlane.f32.xlu2 %v825_v17 }
 0x2b9   : > { %838 = vadd.xlane.f32.xlu0 %v837_v5  ;;  %v840_v60 = vsel %vm608_vm0, %v820_v4, 0.0 }
 0x2ba   : > { %841 = vadd.xlane.f32.xlu1 %v840_v60 }
 0x2bb   : > { %v902_v55 = vpop.xlane.xlu1 %901 }
 0x2bc   : > { %v904_v19 = vpop.xlane.xlu2 %903  ;;  %v1929_v61 = vperm.slane %v902_v55, %v3114_v33 }
 0x2bd   : > { %v1930_v5 = vperm.slane %v904_v19, %v3114_v33 }
 0x2c0   : > { %911 = vadd.xlane.f32.xlu2 %v898_v35  ;;  %v1937_v35 = vsel %vm751_vm6, %v1930_v5, %v1929_v61 }
 0x2c1   : > { %829 = vadd.xlane.f32.xlu0 %v828_v27 }
 0x2c3   : > { %v906_v60 = vpop.xlane.xlu1 %905 }
 0x2c4   : > { %v1931_v34 = vperm.slane %v906_v60, %v3114_v33 }
 0x2c5   : > { %v3228_v61 = vpop.permute.xlu0 %850 }
 0x2c6   : > { %v1938_v31 = vsel %vm752_vm7, %v1931_v34, %v1937_v35 }
 0x2c8   : > { %844 = vadd.xlane.f32.xlu2 %v843_v40 }
 0x2c9   : > { %909 = vadd.xlane.f32.xlu0 %v897_v30 }
 0x2da   : > { %v908_v27 = vpop.xlane.xlu2 %907 }
 0x2db   : > { %v1932_v21 = vperm.slane %v908_v27, %v3114_v33  ;;  %v3219_v48 = vpop.permute.xlu1 %1883 }
 0x2dd   : > { %v3211_v57 = vsel %vm754_vm8, %v1932_v21, %v1938_v31 }
 0x2e8   : > { %v1678_v1 = vpop.f32.mrf.mxu0  ;;  %v1707_v41 = vpop.f32.mrf.mxu1 }
 0x2f0   : > { %v1540_v11 = vpop.f32.mrf.mxu2  ;;  %v1569_v36 = vpop.f32.mrf.mxu3 }
 0x2f1   : > { %v1679_v10 = vadd.f32 %v1678_v1, %v1540_v11  ;;  %v1708_v12 = vadd.f32 %v1707_v41, %v1569_v36  ;;  %v1680_v23 = vpop.f32.mrf.mxu0  ;;  %v1709_v24 = vpop.f32.mrf.mxu1  ;;  %v1734_v1 = vsel %vm752_vm7, %v3126_v47, %v3161_v0 }
 0x2f2   : > { %v1735_v43 = vrot.slane %v1734_v1, 2 }
 0x2f3   : > { %v1779_v51 = vadd.f32 %v1747_v45, %v1679_v10  ;;  %v1780_v53 = vadd.f32 %v1748_v46, %v1708_v12  ;;  %v1736_v45 = vsel %vm754_vm8, %v3126_v47, %v3161_v0 }
 0x2f4   : > { %v1751_v11 = vperm.slane %v1735_v43, 0  ;;  %v1752_v9 = vperm.slane %v1735_v43, 1  ;;  %v1737_v25 = vrot.slane %v1736_v45, 3 }
 0x2f5   : > { %v1801_v15 = vadd.f32 %v3185_v6, %v1779_v51  ;;  %v1802_v56 = vadd.f32 %v3187_v29, %v1780_v53 }
 0x2f7   : > { %v1817_v13 = vmax.f32 %v1801_v15, 0.0  ;;  %v1818_v44 = vmax.f32 %v1802_v56, 0.0 }
 0x2f8   : > { %v1542_v59 = vpop.f32.mrf.mxu2  ;;  %v1571_v62 = vpop.f32.mrf.mxu3 }
 0x2f9   : > { %v1681_v58 = vadd.f32 %v1680_v23, %v1542_v59  ;;  %v1710_v54 = vadd.f32 %v1709_v24, %v1571_v62  ;;  %v1839_v16 = vmul.f32 %v3194_v37, %v1817_v13  ;;  %v1840_v8 = vmul.f32 %v3196_v52, %v1818_v44 }
 0x2fa   : > { %v1753_v44 = vperm.slane %v1737_v25, 0 }
 0x2fb   : > { %v1781_v4 = vadd.f32 %v1749_v20, %v1681_v58  ;;  %v1782_v17 = vadd.f32 %v1750_v38, %v1710_v54  ;;  %v1855_v26 = vadd.f32 %v1840_v8, %v1839_v16  ;;  %v1754_v20 = vperm.slane %v1737_v25, 1 }
 0x2fc   : > { %v1738_v38 = vsel %vm756_vm9, %v3126_v47, %v3161_v0 }
 0x2fd   : > { %v1803_v63 = vadd.f32 %v3185_v6, %v1781_v4  ;;  %v1804_v50 = vadd.f32 %v3187_v29, %v1782_v17  ;;  %1856 = vadd.xlane.f32.xlu2 %v1855_v26  ;;  %v1739_v5 = vrot.slane %v1738_v38, 4 }
 0x2ff   : > { %v1819_v3 = vmax.f32 %v1803_v63, 0.0  ;;  %v1820_v7 = vmax.f32 %v1804_v50, 0.0  ;;  %v1756_v35 = vperm.slane %v1739_v5, 1 }
 0x301   : > { %v1841_v42 = vmul.f32 %v3194_v37, %v1819_v3  ;;  %v1842_v18 = vmul.f32 %v3196_v52, %v1820_v7  ;;  %v1755_v3 = vperm.slane %v1739_v5, 0 }
 0x303   : > { %v1858_v32 = vadd.f32 %v1842_v18, %v1841_v42 }
 0x305   : > { %1859 = vadd.xlane.f32.xlu1 %v1858_v32 }
 0x311   : > { %v1683_v40 = vpop.f32.mrf.mxu0  ;;  %v1712_v30 = vpop.f32.mrf.mxu1 }
 0x319   : > { %v1545_v41 = vpop.f32.mrf.mxu2  ;;  %v1574_v2 = vpop.f32.mrf.mxu3 }
 0x31a   : > { %v1684_v46 = vadd.f32 %v1683_v40, %v1545_v41  ;;  %v1713_v36 = vadd.f32 %v1712_v30, %v1574_v2  ;;  %v1685_v10 = vpop.f32.mrf.mxu0  ;;  %v1714_v12 = vpop.f32.mrf.mxu1  ;;  %v1741_v2 = vrot.slane %v3166_v22, 5 }
 0x31c   : > { %v1783_v51 = vadd.f32 %v1751_v11, %v1684_v46  ;;  %v1784_v53 = vadd.f32 %v1752_v9, %v1713_v36 }
 0x31d   : > { %v824_v63 = vpop.xlane.xlu1 %823 }
 0x31e   : > { %v1805_v55 = vadd.f32 %v3185_v6, %v1783_v51  ;;  %v1806_v15 = vadd.f32 %v3187_v29, %v1784_v53  ;;  %v1757_v53 = vperm.slane %v1741_v2, 0 }
 0x320   : > { %v1821_v56 = vmax.f32 %v1805_v55, 0.0  ;;  %v1822_v23 = vmax.f32 %v1806_v15, 0.0  ;;  %v1758_v55 = vperm.slane %v1741_v2, 1 }
 0x321   : > { %v1547_v13 = vpop.f32.mrf.mxu2  ;;  %v1576_v24 = vpop.f32.mrf.mxu3 }
 0x322   : > { %v1686_v19 = vadd.f32 %v1685_v10, %v1547_v13  ;;  %v1715_v59 = vadd.f32 %v1714_v12, %v1576_v24  ;;  %v1688_v62 = vpop.f32.mrf.mxu0  ;;  %v1717_v58 = vpop.f32.mrf.mxu1  ;;  %v1843_v54 = vmul.f32 %v3194_v37, %v1821_v56  ;;  %v1844_v16 = vmul.f32 %v3196_v52, %v1822_v23 }
 0x323   : > { %v836_v8 = vpop.xlane.xlu2 %835  ;;  %v853_v12 = vadd.f32 %v3228_v61, %v824_v63 }
 0x324   : > { %v1785_v4 = vadd.f32 %v1753_v44, %v1686_v19  ;;  %v1786_v17 = vadd.f32 %v1754_v20, %v1715_v59  ;;  %v1861_v26 = vadd.f32 %v1844_v16, %v1843_v54  ;;  %v1743_v44 = vrot.slane %v3171_v28, 6  ;;  %v2495_v54 = vld [vmem:[%s2806_s26 + $0x18] sm:$0xf] }
 0x325   : > { %v833_v11 = vpop.xlane.xlu1 %832  ;;  %v867_v16 = vunpack.c.l.bf16 %v2495_v54 }
 0x326   : > { %v1807_v50 = vadd.f32 %v3185_v6, %v1785_v4  ;;  %v1808_v47 = vadd.f32 %v3187_v29, %v1786_v17  ;;  %1862 = vadd.xlane.f32.xlu2 %v1861_v26  ;;  %v856_v13 = vadd.f32 %v3228_v61, %v833_v11  ;;  %v1904_v4 = vperm.slane %v853_v12, %v3114_v33  ;;  %v2496_v11 = vld [vmem:[%s2806_s26 + $0x1c] sm:$0xf] }
 0x328   : > { %v1823_v0 = vmax.f32 %v1807_v50, 0.0  ;;  %v1824_v60 = vmax.f32 %v1808_v47, 0.0  ;;  %v1759_v50 = vperm.slane %v1743_v44, 0  ;;  %v1907_v47 = vperm.slane %v856_v13, %v3114_v33 }
 0x329   : > { %v1550_v34 = vpop.f32.mrf.mxu2  ;;  %v1579_v7 = vpop.f32.mrf.mxu3 }
 0x32a   : > { %v1689_v42 = vadd.f32 %v1688_v62, %v1550_v34  ;;  %v1718_v18 = vadd.f32 %v1717_v58, %v1579_v7  ;;  %v1845_v27 = vmul.f32 %v3194_v37, %v1823_v0  ;;  %v1846_v31 = vmul.f32 %v3196_v52, %v1824_v60  ;;  %v1690_v21 = vpop.f32.mrf.mxu0  ;;  %v1719_v30 = vpop.f32.mrf.mxu1 }
 0x32b   : > { %v827_v41 = vpop.xlane.xlu2 %826  ;;  %v857_v62 = vadd.f32 %v3228_v61, %v836_v8 }
 0x32c   : > { %v1787_v32 = vadd.f32 %v1755_v3, %v1689_v42  ;;  %v1788_v40 = vadd.f32 %v1756_v35, %v1718_v18  ;;  %v3234_v1 = vpop.xlane.xlu0 %838  ;;  %v1864_v43 = vadd.f32 %v1846_v31, %v1845_v27  ;;  %v854_v10 = vadd.f32 %v3228_v61, %v827_v41 }
 0x32d   : > { %v1908_v34 = vperm.slane %v857_v62, %v3114_v33  ;;  %v1760_v42 = vperm.slane %v1743_v44, 1  ;;  %v899_v18 = vmul.f32 %v3132_v49, %v867_v16 }
 0x32e   : > { %v1809_v45 = vadd.f32 %v3185_v6, %v1787_v32  ;;  %v1810_v46 = vadd.f32 %v3187_v29, %v1788_v40  ;;  %1865 = vadd.xlane.f32.xlu2 %v1864_v43  ;;  %v1905_v24 = vperm.slane %v854_v10, %v3114_v33 }
 0x330   : > { %v1825_v36 = vmax.f32 %v1809_v45, 0.0  ;;  %v1826_v9 = vmax.f32 %v1810_v46, 0.0  ;;  %v1912_v8 = vsel %vm751_vm6, %v1905_v24, %v1904_v4  ;;  %v1746_v45 = vrot.slane %v3175_v14, 7 }
 0x331   : > { %v1552_v51 = vpop.f32.mrf.mxu2  ;;  %v1581_v25 = vpop.f32.mrf.mxu3 }
 0x332   : > { %v1691_v15 = vadd.f32 %v1690_v21, %v1552_v51  ;;  %v1720_v56 = vadd.f32 %v1719_v30, %v1581_v25  ;;  %v1847_v22 = vmul.f32 %v3194_v37, %v1825_v36  ;;  %v1848_v23 = vmul.f32 %v3196_v52, %v1826_v9  ;;  %v1693_v5 = vpop.f32.mrf.mxu0  ;;  %v1722_v28 = vpop.f32.mrf.mxu1 }
 0x333   : > { %v868_v36 = vunpack.c.l.bf16 %v2496_v11  ;;  %v912_v9 = vpop.xlane.xlu2 %911  ;;  %v1762_v14 = vperm.slane %v1746_v45, 1 }
 0x334   : > { %v1789_v20 = vadd.f32 %v1757_v53, %v1691_v15  ;;  %v1790_v38 = vadd.f32 %v1758_v55, %v1720_v56  ;;  %v830_v19 = vpop.xlane.xlu0 %829  ;;  %v1867_v59 = vadd.f32 %v1848_v23, %v1847_v22  ;;  %v1934_v25 = vperm.slane %v912_v9, %v3114_v33 }
 0x335   : > { %v855_v58 = vadd.f32 %v3228_v61, %v830_v19  ;;  %v1761_v15 = vperm.slane %v1746_v45, 0  ;;  %v900_v13 = vmul.f32 %v3128_v39, %v868_v36 }
 0x336   : > { %v1811_v17 = vadd.f32 %v3185_v6, %v1789_v20  ;;  %v1812_v26 = vadd.f32 %v3187_v29, %v1790_v38  ;;  %1868 = vadd.xlane.f32.xlu2 %v1867_v59 }
 0x337   : > { %v1906_v63 = vperm.slane %v855_v58, %v3114_v33 }
 0x338   : > { %v1827_v0 = vmax.f32 %v1811_v17, 0.0  ;;  %v1828_v60 = vmax.f32 %v1812_v26, 0.0 }
 0x339   : > { %v1913_v3 = vsel %vm752_vm7, %v1906_v63, %v1912_v8  ;;  %v1555_v7 = vpop.f32.mrf.mxu2  ;;  %v1584_v35 = vpop.f32.mrf.mxu3  ;;  %v858_v8 = vadd.f32 %v3228_v61, %v3234_v1 }
 0x33a   : > { %v1914_v27 = vsel %vm754_vm8, %v1907_v47, %v1913_v3  ;;  %v1694_v31 = vadd.f32 %v1693_v5, %v1555_v7  ;;  %v1723_v21 = vadd.f32 %v1722_v28, %v1584_v35  ;;  %v1849_v32 = vmul.f32 %v3194_v37, %v1827_v0  ;;  %v1695_v51 = vpop.f32.mrf.mxu0  ;;  %v1724_v53 = vpop.f32.mrf.mxu1  ;;  %v1894_v7 = vld [vmem:[%s467_s28] sm:$0xff] }
 0x33b   : > { %v1915_v40 = vsel %vm756_vm9, %v1908_v34, %v1914_v27  ;;  %v1850_v30 = vmul.f32 %v3196_v52, %v1828_v60  ;;  %v845_v28 = vpop.xlane.xlu2 %844  ;;  %v842_v47 = vpop.xlane.xlu1 %841 }
 0x33c   : > { %v1791_v43 = vadd.f32 %v1759_v50, %v1694_v31  ;;  %v1792_v41 = vadd.f32 %v1760_v42, %v1723_v21  ;;  %v910_v46 = vpop.xlane.xlu0 %909  ;;  %v860_v0 = vadd.f32 %v3228_v61, %v845_v28  ;;  %v859_v60 = vadd.f32 %v3228_v61, %v842_v47 }
 0x33d   : > { %v1870_v2 = vadd.f32 %v1850_v30, %v1849_v32  ;;  %v1933_v49 = vperm.slane %v910_v46, %v3114_v33  ;;  %v1895_v61 = vmul.f32 0.5, %v1894_v7 }
 0x33e   : > { %913 = vadd.xlane.f32.xlu2 %v899_v18  ;;  %v1813_v10 = vadd.f32 %v3185_v6, %v1791_v43  ;;  %v1814_v12 = vadd.f32 %v3187_v29, %v1792_v41  ;;  %v1910_v35 = vperm.slane %v859_v60, %v3114_v33 }
 0x33f   : > { %1871 = vadd.xlane.f32.xlu1 %v1870_v2  ;;  %v1940_v44 = vsel %vm756_vm9, %v1933_v49, %v3211_v57 }
 0x340   : > { %v1829_v24 = vmax.f32 %v1813_v10, 0.0  ;;  %v1830_v20 = vmax.f32 %v1814_v12, 0.0  ;;  %v1941_v59 = vsel %vm758_vm2, %v1934_v25, %v1940_v44 }
 0x341   : > { %v1557_v55 = vpop.f32.mrf.mxu2  ;;  %v1586_v56 = vpop.f32.mrf.mxu3 }
 0x342   : > { %v1696_v22 = vadd.f32 %v1695_v51, %v1557_v55  ;;  %v1725_v23 = vadd.f32 %v1724_v53, %v1586_v56  ;;  %v1851_v54 = vmul.f32 %v3194_v37, %v1829_v24  ;;  %v1852_v16 = vmul.f32 %v3196_v52, %v1830_v20 }
 0x344   : > { %v1793_v38 = vadd.f32 %v1761_v15, %v1696_v22  ;;  %v1794_v19 = vadd.f32 %v1762_v14, %v1725_v23  ;;  %v1873_v17 = vadd.f32 %v1852_v16, %v1851_v54 }
 0x346   : > { %915 = vadd.xlane.f32.xlu2 %v900_v13  ;;  %v1815_v62 = vadd.f32 %v3185_v6, %v1793_v38  ;;  %v1816_v58 = vadd.f32 %v3187_v29, %v1794_v19 }
 0x348   : > { %v1831_v4 = vmax.f32 %v1815_v62, 0.0  ;;  %v1832_v39 = vmax.f32 %v1816_v58, 0.0 }
 0x34a   : > { %v1853_v57 = vmul.f32 %v3194_v37, %v1831_v4  ;;  %v1854_v26 = vmul.f32 %v3196_v52, %v1832_v39  ;;  %v1909_v37 = vperm.slane %v858_v8, %v3114_v33  ;;  %v1911_v52 = vperm.slane %v860_v0, %v3114_v33 }
 0x34c   : > { %v1876_v5 = vadd.f32 %v1854_v26, %v1853_v57  ;;  %v1916_v3 = vsel %vm758_vm2, %v1909_v37, %v1915_v40 }
 0x34d   : > { %v1917_v1 = vsel %vm760_vm3, %v1910_v35, %v1916_v3 }
 0x34e   : > { %1874 = vadd.xlane.f32.xlu2 %v1873_v17  ;;  %v1918_v18 = vsel %vm762_vm10, %v1911_v52, %v1917_v1 }
 0x34f   : > { %v1920_v30 = vadd.f32 %v1918_v18, %v1895_v61 }
 0x356   : > { %1877 = vadd.xlane.f32.xlu2 %v1876_v5 }
 0x370   : > { %v1857_v63 = vpop.xlane.xlu2 %1856 }
 0x371   : > { %v1886_v11 = vadd.f32 %v3219_v48, %v1857_v63 }
 0x373   : > { %v1954_v53 = vperm.slane %v1886_v11, %v3114_v33 }
 0x378   : > { %v1860_v27 = vpop.xlane.xlu1 %1859 }
 0x379   : > { %v1887_v41 = vadd.f32 %v3219_v48, %v1860_v27 }
 0x37b   : > { %v1955_v9 = vperm.slane %v1887_v41, %v3114_v33 }
 0x37d   : > { %v1962_v15 = vsel %vm751_vm6, %v1955_v9, %v1954_v53 }
 0x399   : > { %v1863_v6 = vpop.xlane.xlu2 %1862 }
 0x39a   : > { %v1888_v2 = vadd.f32 %v3219_v48, %v1863_v6 }
 0x39c   : > { %v1956_v12 = vperm.slane %v1888_v2, %v3114_v33 }
 0x39e   : > { %v1963_v14 = vsel %vm752_vm7, %v1956_v12, %v1962_v15 }
 0x3a1   : > { %v1866_v50 = vpop.xlane.xlu2 %1865 }
 0x3a2   : > { %v1889_v36 = vadd.f32 %v3219_v48, %v1866_v50 }
 0x3a4   : > { %v1957_v25 = vperm.slane %v1889_v36, %v3114_v33 }
 0x3a6   : > { %v1964_v13 = vsel %vm754_vm8, %v1957_v25, %v1963_v14 }
 0x3a9   : > { %v1869_v29 = vpop.xlane.xlu2 %1868 }
 0x3aa   : > { %v1890_v49 = vadd.f32 %v3219_v48, %v1869_v29 }
 0x3ac   : > { %v1958_v55 = vperm.slane %v1890_v49, %v3114_v33 }
 0x3ae   : > { %v1965_v24 = vsel %vm756_vm9, %v1958_v55, %v1964_v13 }
 0x3b1   : > { %v914_v34 = vpop.xlane.xlu2 %913 }
 0x3b2   : > { %v1935_v42 = vperm.slane %v914_v34, %v3114_v33  ;;  %v1872_v45 = vpop.xlane.xlu1 %1871 }
 0x3b3   : > { %v1891_v10 = vadd.f32 %v3219_v48, %v1872_v45 }
 0x3b4   : > { %v1942_v32 = vsel %vm760_vm3, %v1935_v42, %v1941_v59 }
 0x3b5   : > { %v1959_v56 = vperm.slane %v1891_v10, %v3114_v33 }
 0x3b7   : > { %v1966_v20 = vsel %vm758_vm2, %v1959_v56, %v1965_v24 }
 0x3b9   : > { %v916_v31 = vpop.xlane.xlu2 %915 }
 0x3ba   : > { %v1936_v21 = vperm.slane %v916_v31, %v3114_v33 }
 0x3bc   : > { %v1943_v40 = vsel %vm762_vm10, %v1936_v21, %v1942_v32 }
 0x3bd   : > { %v1945_v43 = vadd.f32 %v1943_v40, %v1920_v30 }
 0x3c1   : > { %v1875_v46 = vpop.xlane.xlu2 %1874 }
 0x3c2   : > { %v1892_v51 = vadd.f32 %v3219_v48, %v1875_v46 }
 0x3c4   : > { %v1960_v22 = vperm.slane %v1892_v51, %v3114_v33 }
 0x3c6   : > { %v1967_v19 = vsel %vm760_vm3, %v1960_v22, %v1966_v20 }
 0x3c9   : > { %v1878_v23 = vpop.xlane.xlu2 %1877 }
 0x3ca   : > { %v1893_v44 = vadd.f32 %v3219_v48, %v1878_v23 }
 0x3cc   : > { %v1961_v38 = vperm.slane %v1893_v44, %v3114_v33 }
 0x3ce   : > { %v1968_v59 = vsel %vm762_vm10, %v1961_v38, %v1967_v19 }
 0x3cf   : > { %v1970_v62 = vadd.f32 %v1968_v59, %v1945_v43 }
 0x3d1   : > { %1971 = vst.msk [vmem:[%s477_s20] sm:$0xff] %vm608_vm0, %v1970_v62 }
 0x3d2 PF: > { %s3360_s12 = sld [smem:[#allocation12_spill]]  ;;  %p27_p4 = scmp.ge.s32.totalorder %s2741_s27, 4  }
 0x3d3   : > { %s3361_s19 = sld [smem:[#allocation13_spill]]  ;;  %s3362_s17 = smov %s2621_s18 }
 0x3d4   : > { %s3364_s20 = smov %s2741_s27  ;;  %29 = sbr.rel (!%p27_p4) target bundleno = 9 (0x9), region = 125 }
 0x3d8   : > { %s3363_s18 = smov %s3360_s12 }
 0x3d9   :  { %1991 = vsyncpa [#allocation5], 1 }
 0x3da   :  { %1993 = vsyncpa [#allocation5 + $0x1], 1 }
 0x3db   :  { %1994 = vsyncpa [#allocation7], 1 }
 0x3dc   :  { %1996 = vsyncpa [#allocation7 + $0x1], 1 }

</bundles_post_ra>
